<compile_context>
chip_gen: v6e
topology: v6e:2x2x1
jax: 0.10.0
libtpu: 0.0.40
codegen_flags: <defaults>
</compile_context>

<pallas_src>
import functools

import jax
import jax.numpy as jnp
from jax.experimental import pallas as pl
from jax.experimental.pallas import tpu as pltpu

IN_FEATURES = 1000
K_PAD = 1024           # contraction dim padded to a multiple of 128
HIDDEN = 512
NUM_CLASSES = 2
COSFACE_S = 30.0
COSFACE_M = 0.4
EPS = 1e-12            # torch F.normalize default eps
MAX_TILE_M = 256       # batch-tile rows (fits v7x VMEM comfortably, bf16 x)


def _round_up(n, m):
    return ((n + m - 1) // m) * m


def _spoof_kernel(x_ref, w1_ref, b1_ref, w2t_ref, labels_ref,
                  wf_ref, lsum_ref, *, tm, batch):
    # x_ref: (tm, K_PAD) bf16   w1_ref: (K_PAD, HID) bf16   b1_ref: (1, HID) f32
    # w2t_ref: (HID, C) f32 (pre-normalized, pre-transposed)
    # labels_ref: (tm, 1) int32
    # wf_ref: (tm, C) f32       lsum_ref: (1, 8, 128) f32 per-tile partial sum

    # ---- Linear(1000, 512) + ReLU: bf16 operands, f32 MXU accumulation ----
    h = jnp.dot(x_ref[...], w1_ref[...], preferred_element_type=jnp.float32)
    h = jnp.maximum(h + b1_ref[...], 0.0)                      # (tm, HID) f32

    # ---- Deferred feature L2-normalization ----
    sq = jnp.sum(h * h, axis=-1, keepdims=True)                # (tm, 1)
    inv_norm = pl.reciprocal(jnp.maximum(jnp.sqrt(sq), EPS), approx=True)

    # ---- Cosine logits: (h @ Wn.T) scaled by 1/||h|| (row scaling commutes) ----
    raw = jnp.dot(h, w2t_ref[...], preferred_element_type=jnp.float32)  # (tm, C)
    wf = raw * inv_norm
    wf_ref[...] = wf

    # ---- CosFace loss terms (per row), masked for batch padding ----
    labels = labels_ref[...]                                   # (tm, 1)
    cls_ids = jax.lax.broadcasted_iota(jnp.int32, wf.shape, 1) # (tm, C)
    is_target = cls_ids == labels

    target_cos = jnp.sum(jnp.where(is_target, wf, 0.0), axis=-1, keepdims=True)
    numerator = COSFACE_S * (target_cos - COSFACE_M)           # (tm, 1)
    excl_sum = jnp.sum(jnp.where(is_target, 0.0, jnp.exp(COSFACE_S * wf)),
                       axis=-1, keepdims=True)
    denominator = jnp.exp(numerator) + excl_sum
    L = numerator - jnp.log(denominator)                       # (tm, 1)

    i = pl.program_id(0)
    row_ids = i * tm + jax.lax.broadcasted_iota(jnp.int32, L.shape, 0)
    L = jnp.where(row_ids < batch, L, 0.0)                     # mask padded rows

    # Lane-dense per-tile partial sum (single unmasked (8,128) store).
    lsum_ref[...] = jnp.full(lsum_ref.shape, jnp.sum(L), jnp.float32)


def spoof_classifier_auc_forward(x, labels, w1, b1, w2, positive):
    """x: (B, 1000) f32, labels: (B,) int, w1: (1000, 512), b1: (512,), w2: (2, 512)."""
    B = x.shape[0]
    tm = min(MAX_TILE_M, _round_up(B, 8))
    num_tiles = pl.cdiv(B, tm)
    B_pad = num_tiles * tm

    # bf16 streaming operands, zero-padded to (B_pad, 1024) / (1024, 512).
    x_p = jnp.zeros((B_pad, K_PAD), jnp.bfloat16)
    x_p = x_p.at[:B, :IN_FEATURES].set(x.astype(jnp.bfloat16))
    w1_p = jnp.zeros((K_PAD, HIDDEN), jnp.bfloat16)
    w1_p = w1_p.at[:IN_FEATURES, :].set(w1.astype(jnp.bfloat16))
    b1_2d = b1.reshape(1, HIDDEN).astype(jnp.float32)

    # Hoisted classifier-weight normalization (done once in XLA, f32).
    w2f = w2.astype(jnp.float32)
    w2n = w2f / jnp.maximum(jnp.linalg.norm(w2f, axis=1, keepdims=True), EPS)
    w2t = jnp.transpose(w2n)                                   # (HID, C)

    labels_p = jnp.zeros((B_pad, 1), jnp.int32)
    labels_p = labels_p.at[:B, 0].set(labels.astype(jnp.int32))

    kernel = functools.partial(_spoof_kernel, tm=tm, batch=B)

    grid_spec = pltpu.PrefetchScalarGridSpec(
        num_scalar_prefetch=0,
        grid=(num_tiles,),
        in_specs=[
            pl.BlockSpec((tm, K_PAD), lambda i: (i, 0)),        # x: tiled over B
            pl.BlockSpec((K_PAD, HIDDEN), lambda i: (0, 0)),    # W1: VMEM-resident
            pl.BlockSpec((1, HIDDEN), lambda i: (0, 0)),        # b1
            pl.BlockSpec((HIDDEN, NUM_CLASSES), lambda i: (0, 0)),  # Wn.T
            pl.BlockSpec((tm, 1), lambda i: (i, 0)),            # labels
        ],
        out_specs=[
            pl.BlockSpec((tm, NUM_CLASSES), lambda i: (i, 0)),  # wf
            pl.BlockSpec((1, 8, 128), lambda i: (i, 0, 0)),     # per-tile loss partial
        ],
    )

    wf_pad, partials = pl.pallas_call(
        kernel,
        out_shape=(
            jax.ShapeDtypeStruct((B_pad, NUM_CLASSES), jnp.float32),
            jax.ShapeDtypeStruct((num_tiles, 8, 128), jnp.float32),
        ),
        grid_spec=grid_spec,
        compiler_params=pltpu.CompilerParams(
            dimension_semantics=("parallel",)),
    )(x_p, w1_p, b1_2d, w2t, labels_p)

    wf = wf_pad[:B]
    if positive:
        loss = -jnp.sum(partials[:, 0, 0]) / B   # true-B mean; padding masked in-kernel
        return wf, loss
    return wf


def _reference_forward(x, labels, w1, b1, w2):
    """Pure-JAX f32 reference of the module forward."""
    h = jnp.maximum(x @ w1 + b1, 0.0)
    hn = h / jnp.maximum(jnp.linalg.norm(h, axis=1, keepdims=True), EPS)
    w2n = w2 / jnp.maximum(jnp.linalg.norm(w2, axis=1, keepdims=True), EPS)
    wf = hn @ w2n.T
    tgt = jnp.take_along_axis(wf, labels[:, None], axis=1)[:, 0]
    num = COSFACE_S * (tgt - COSFACE_M)
    onehot = jax.nn.one_hot(labels, NUM_CLASSES, dtype=bool)
    excl = jnp.sum(jnp.where(onehot, 0.0, jnp.exp(COSFACE_S * wf)), axis=1)
    L = num - jnp.log(jnp.exp(num) + excl)
    return wf, -jnp.mean(L)


def _check(B, key):
    k_x, k_w1, k_b1, k_w2, k_lab = jax.random.split(key, 5)
    x = jax.random.normal(k_x, (B, IN_FEATURES), dtype=jnp.float32)
    labels = jax.random.randint(k_lab, (B,), 0, NUM_CLASSES, dtype=jnp.int32)

    lim1 = 1.0 / (IN_FEATURES ** 0.5)
    w1 = jax.random.uniform(k_w1, (IN_FEATURES, HIDDEN), jnp.float32, -lim1, lim1)
    b1 = jax.random.uniform(k_b1, (HIDDEN,), jnp.float32, -lim1, lim1)
    lim2 = 1.0 / (HIDDEN ** 0.5)
    w2 = jax.random.uniform(k_w2, (NUM_CLASSES, HIDDEN), jnp.float32, -lim2, lim2)

    # positive == True path: (features, result)
    features, result = spoof_classifier_auc_forward(x, labels, w1, b1, w2, positive=True)
    jax.block_until_ready((features, result))

    # positive == False path: features only
    features_only = spoof_classifier_auc_forward(x, labels, w1, b1, w2, positive=False)
    jax.block_until_ready(features_only)

    # The kernel streams x/W1 as bf16 (f32 accumulation). Check against the
    # f32 reference evaluated on the same bf16-rounded inputs (tight), and
    # loosely against the pure-f32 reference (mixed-precision rounding only).
    x_r = x.astype(jnp.bfloat16).astype(jnp.float32)
    w1_r = w1.astype(jnp.bfloat16).astype(jnp.float32)
    ref_wf, ref_loss = _reference_forward(x_r, labels, w1_r, b1, w2)
    assert jnp.allclose(features, ref_wf, rtol=5e-3, atol=5e-3)
    assert jnp.allclose(result, ref_loss, rtol=2e-2, atol=2e-2)
    assert jnp.allclose(features_only, ref_wf, rtol=5e-3, atol=5e-3)

    f32_wf, _ = _reference_forward(x, labels, w1, b1, w2)
    assert jnp.allclose(features, f32_wf, rtol=5e-2, atol=5e-2)


if __name__ == "__main__":
    key = jax.random.PRNGKey(0)
    k_a, k_b = jax.random.split(key)
    _check(B=8, key=k_a)      # single tile, no padding
    _check(B=260, key=k_b)    # two tiles (tm=256) + padded rows -> masked mean
    print("KERNEL_OK")
</pallas_src>

<mosaic_0001>
module attributes {stable_mosaic.version = 11 : i64} {
  func.func @_spoof_kernel(%arg0: i32, %arg1: memref<8x1024xbf16, #tpu.memory_space<vmem>>, %arg2: memref<1024x512xbf16, #tpu.memory_space<vmem>>, %arg3: memref<1x512xf32, #tpu.memory_space<vmem>>, %arg4: memref<512x2xf32, #tpu.memory_space<vmem>>, %arg5: memref<8x1xi32, #tpu.memory_space<vmem>>, %arg6: memref<8x2xf32, #tpu.memory_space<vmem>>, %arg7: memref<1x8x128xf32, #tpu.memory_space<vmem>>) attributes {dimension_semantics = [#tpu.dimension_semantics<parallel>], iteration_bounds = array<i64: 1>, scalar_prefetch = 0 : i64, scratch_operands = 0 : i64, tpu.core_type = #tpu.core_type<tc>, window_params = [{transform_indices = @transform_0, window_bounds = array<i64: 8, 1024>}, {pipeline_mode = #tpu.pipeline_mode<synchronous>, transform_indices = @transform_1, window_bounds = array<i64: 1024, 512>}, {pipeline_mode = #tpu.pipeline_mode<synchronous>, transform_indices = @transform_2, window_bounds = array<i64: 1, 512>}, {pipeline_mode = #tpu.pipeline_mode<synchronous>, transform_indices = @transform_3, window_bounds = array<i64: 512, 2>}, {transform_indices = @transform_4, window_bounds = array<i64: 8, 1>}, {transform_indices = @transform_5, window_bounds = array<i64: 8, 2>}, {transform_indices = @transform_6, window_bounds = array<i64: 1, 8, 128>}]} {
    %c0 = arith.constant 0 : index
    %c0_0 = arith.constant 0 : index
    %0 = vector.load %arg1[%c0, %c0_0] : memref<8x1024xbf16, #tpu.memory_space<vmem>>, vector<8x1024xbf16>
    %c0_1 = arith.constant 0 : index
    %c0_2 = arith.constant 0 : index
    %1 = vector.load %arg2[%c0_1, %c0_2] : memref<1024x512xbf16, #tpu.memory_space<vmem>>, vector<1024x512xbf16>
    %cst = arith.constant dense<0.000000e+00> : vector<8x512xf32>
    %2 = tpu.matmul %0, %1, %cst {dimension_numbers = #tpu.dot_dimension_numbers<[1], [0], [0], [1], [0, 0, 1, 1], [], []>} : vector<8x1024xbf16>, vector<1024x512xbf16>, vector<8x512xf32> -> vector<8x512xf32>
    %c0_3 = arith.constant 0 : index
    %c0_4 = arith.constant 0 : index
    %3 = vector.load %arg3[%c0_3, %c0_4] : memref<1x512xf32, #tpu.memory_space<vmem>>, vector<1x512xf32>
    %4 = vector.broadcast %3 : vector<1x512xf32> to vector<8x512xf32>
    %5 = arith.addf %2, %4 : vector<8x512xf32>
    %cst_5 = arith.constant 0.000000e+00 : f32
    %6 = vector.broadcast %cst_5 : f32 to vector<8x512xf32>
    %7 = arith.maximumf %5, %6 : vector<8x512xf32>
    %8 = arith.mulf %7, %7 : vector<8x512xf32>
    %cst_6 = arith.constant dense<0.000000e+00> : vector<8xf32>
    %9 = vector.multi_reduction <add>, %8, %cst_6 [1] : vector<8x512xf32> to vector<8xf32>
    %10 = vector.shape_cast %9 : vector<8xf32> to vector<8x1xf32>
    %11 = math.sqrt %10 : vector<8x1xf32>
    %cst_7 = arith.constant 9.99999996E-13 : f32
    %12 = vector.broadcast %cst_7 : f32 to vector<8x1xf32>
    %13 = arith.maximumf %11, %12 : vector<8x1xf32>
    %14 = tpu.reciprocal %13 {approx = true} : vector<8x1xf32> -> vector<8x1xf32>
    %c0_8 = arith.constant 0 : index
    %c0_9 = arith.constant 0 : index
    %15 = vector.load %arg4[%c0_8, %c0_9] : memref<512x2xf32, #tpu.memory_space<vmem>>, vector<512x2xf32>
    %cst_10 = arith.constant dense<0.000000e+00> : vector<8x2xf32>
    %16 = tpu.matmul %7, %15, %cst_10 {dimension_numbers = #tpu.dot_dimension_numbers<[1], [0], [0], [1], [0, 0, 1, 1], [], []>} : vector<8x512xf32>, vector<512x2xf32>, vector<8x2xf32> -> vector<8x2xf32>
    %17 = vector.broadcast %14 : vector<8x1xf32> to vector<8x2xf32>
    %18 = arith.mulf %16, %17 : vector<8x2xf32>
    %c0_11 = arith.constant 0 : index
    %c0_12 = arith.constant 0 : index
    %19 = vector.load %arg6[%c0_11, %c0_12] : memref<8x2xf32, #tpu.memory_space<vmem>>, vector<8x2xf32>
    tpu.vector_store %arg6[%c0_11, %c0_12], %18 {strides = array<i32>} : memref<8x2xf32, #tpu.memory_space<vmem>>, vector<8x2xf32>,
    %c0_13 = arith.constant 0 : index
    %c0_14 = arith.constant 0 : index
    %20 = vector.load %arg5[%c0_13, %c0_14] : memref<8x1xi32, #tpu.memory_space<vmem>>, vector<8x1xi32>
    %21 = tpu.iota {dimensions = array<i32: 1>} : vector<8x2xi32>
    %22 = vector.broadcast %20 : vector<8x1xi32> to vector<8x2xi32>
    %23 = arith.cmpi eq, %21, %22 : vector<8x2xi32>
    %cst_15 = arith.constant 0.000000e+00 : f32
    %24 = vector.broadcast %cst_15 : f32 to vector<8x2xf32>
    %25 = arith.select %23, %18, %24 : vector<8x2xi1>, vector<8x2xf32>
    %cst_16 = arith.constant dense<0.000000e+00> : vector<8xf32>
    %26 = vector.multi_reduction <add>, %25, %cst_16 [1] : vector<8x2xf32> to vector<8xf32>
    %27 = vector.shape_cast %26 : vector<8xf32> to vector<8x1xf32>
    %cst_17 = arith.constant 4.000000e-01 : f32
    %28 = vector.broadcast %cst_17 : f32 to vector<8x1xf32>
    %29 = arith.subf %27, %28 : vector<8x1xf32>
    %cst_18 = arith.constant 3.000000e+01 : f32
    %30 = vector.broadcast %cst_18 : f32 to vector<8x1xf32>
    %31 = arith.mulf %30, %29 : vector<8x1xf32>
    %cst_19 = arith.constant 3.000000e+01 : f32
    %32 = vector.broadcast %cst_19 : f32 to vector<8x2xf32>
    %33 = arith.mulf %32, %18 : vector<8x2xf32>
    %34 = math.exp %33 : vector<8x2xf32>
    %cst_20 = arith.constant 0.000000e+00 : f32
    %35 = vector.broadcast %cst_20 : f32 to vector<8x2xf32>
    %36 = arith.select %23, %35, %34 : vector<8x2xi1>, vector<8x2xf32>
    %cst_21 = arith.constant dense<0.000000e+00> : vector<8xf32>
    %37 = vector.multi_reduction <add>, %36, %cst_21 [1] : vector<8x2xf32> to vector<8xf32>
    %38 = vector.shape_cast %37 : vector<8xf32> to vector<8x1xf32>
    %39 = math.exp %31 : vector<8x1xf32>
    %40 = arith.addf %39, %38 : vector<8x1xf32>
    %41 = math.log %40 : vector<8x1xf32>
    %42 = arith.subf %31, %41 : vector<8x1xf32>
    %c8_i32 = arith.constant 8 : i32
    %43 = arith.muli %arg0, %c8_i32 : i32
    %44 = tpu.iota {dimensions = array<i32: 0>} : vector<8x1xi32>
    %45 = vector.broadcast %43 : i32 to vector<8x1xi32>
    %46 = arith.addi %45, %44 : vector<8x1xi32>
    %c8_i32_22 = arith.constant 8 : i32
    %47 = vector.broadcast %c8_i32_22 : i32 to vector<8x1xi32>
    %48 = arith.cmpi slt, %46, %47 : vector<8x1xi32>
    %cst_23 = arith.constant 0.000000e+00 : f32
    %49 = vector.broadcast %cst_23 : f32 to vector<8x1xf32>
    %50 = arith.select %48, %42, %49 : vector<8x1xi1>, vector<8x1xf32>
    %51 = vector.shape_cast %50 : vector<8x1xf32> to vector<1x8x1xf32>
    %cst_24 = arith.constant dense<0.000000e+00> : vector<1xf32>
    %52 = vector.multi_reduction <add>, %51, %cst_24 [1, 2] : vector<1x8x1xf32> to vector<1xf32>
    %53 = vector.shape_cast %52 : vector<1xf32> to vector<1x1x1xf32>
    %54 = vector.extract %53[0, 0, 0] : f32 from vector<1x1x1xf32>
    %55 = vector.broadcast %54 : f32 to vector<1x8x128xf32>
    %c0_25 = arith.constant 0 : index
    %c0_26 = arith.constant 0 : index
    %c0_27 = arith.constant 0 : index
    %56 = vector.load %arg7[%c0_25, %c0_26, %c0_27] : memref<1x8x128xf32, #tpu.memory_space<vmem>>, vector<1x8x128xf32>
    tpu.vector_store %arg7[%c0_25, %c0_26, %c0_27], %55 {strides = array<i32>} : memref<1x8x128xf32, #tpu.memory_space<vmem>>, vector<1x8x128xf32>,
    return
  }
  func.func @transform_0(%arg0: i32) -> (i32, i32) {
    %c0_i32 = arith.constant 0 : i32
    %c0_i32_0 = arith.constant 0 : i32
    return %arg0, %c0_i32 : i32, i32
  }
  func.func @transform_1(%arg0: i32) -> (i32, i32) {
    %c0_i32 = arith.constant 0 : i32
    %c0_i32_0 = arith.constant 0 : i32
    %c0_i32_1 = arith.constant 0 : i32
    return %c0_i32, %c0_i32_0 : i32, i32
  }
  func.func @transform_2(%arg0: i32) -> (i32, i32) {
    %c0_i32 = arith.constant 0 : i32
    %c0_i32_0 = arith.constant 0 : i32
    %c0_i32_1 = arith.constant 0 : i32
    return %c0_i32, %c0_i32_0 : i32, i32
  }
  func.func @transform_3(%arg0: i32) -> (i32, i32) {
    %c0_i32 = arith.constant 0 : i32
    %c0_i32_0 = arith.constant 0 : i32
    %c0_i32_1 = arith.constant 0 : i32
    return %c0_i32, %c0_i32_0 : i32, i32
  }
  func.func @transform_4(%arg0: i32) -> (i32, i32) {
    %c0_i32 = arith.constant 0 : i32
    %c0_i32_0 = arith.constant 0 : i32
    return %arg0, %c0_i32 : i32, i32
  }
  func.func @transform_5(%arg0: i32) -> (i32, i32) {
    %c0_i32 = arith.constant 0 : i32
    %c0_i32_0 = arith.constant 0 : i32
    return %arg0, %c0_i32 : i32, i32
  }
  func.func @transform_6(%arg0: i32) -> (i32, i32, i32) {
    %c0_i32 = arith.constant 0 : i32
    %c0_i32_0 = arith.constant 0 : i32
    %c0_i32_1 = arith.constant 0 : i32
    return %arg0, %c0_i32, %c0_i32_0 : i32, i32, i32
  }
}

</mosaic_0001>

<bundles_post_ra>
// kernel: tpu_custom_call.1
= control target key start
LH: loop header
LB: loop body
LE: loop exit
PB: predicated region body
PF: predicated region fallthrough
CT: control target
= control target key end

     0   :  { %12 = vsyncpa [#allocation3], 0  ;;  %s3361_s0 = inlined_call_operand.vmem [shape: bf16[8,1024], index: 0, kind: input, shape index: {}]   ;;  %s3362_s1 = inlined_call_operand.hbm [shape: bf16[1024,512], index: 1, kind: input, shape index: {}]   ;;  %s3363_s2 = inlined_call_operand.vmem [shape: f32[1,512], index: 2, kind: input, shape index: {}]   ;;  %s3364_s3 = inlined_call_operand.vmem [shape: f32[512,2], index: 3, kind: input, shape index: {}]   ;;  %s3365_s4 = inlined_call_operand.vmem [shape: s32[8,1], index: 4, kind: input, shape index: {}]   ;;  %s3366_s5 = inlined_call_operand.vmem [shape: f32[8,2], index: 5, kind: output, shape index: {0}]   ;;  %s3367_s6 = inlined_call_operand.hbm [shape: f32[1,8,128], index: 6, kind: output, shape index: {1}]  }
   0x1   :  { %13 = vsyncpa [#allocation4], 0  ;;  %s3038_s21 = smov [#allocation2]  }
   0x2   :  { %s21_s22 = sshll.u32 %s3038_s21, 4  ;;  %s22_s22 = int_to_ptr.vmem [resolvable:$true] %s21_s22 }
   0x3   :  { %s3002_s23 = scalar_lea.vmem %s22_s22, 32768  ;;  %p3007_p1 = scmp.lt.s32.totalorder %s22_s22, %s22_s22 }
   0x4   :  { %p3003_p0 = scmp.ne.s32.totalorder %s22_s22, %s3002_s23  ;;  %p3008_p2 = scmp.lt.s32.totalorder %s3002_s23, %s3002_s23 }
   0x6   :  { %p3009_p3 = por %p3008_p2, %p3007_p1 }
   0x8   :  { %p3010_p4 = pnand %p3009_p3, %p3003_p0 }
   0xa   :  { %3013 = shalt.err (!%p3010_p4)
}
   0xb   :  { %s3039_s24 = smov 256   ;;  %s3040_s25 = smov 16  }
   0xc   :  { %27 = dma.hbm_to_vmem [thread:$0]  %s3362_s1, 32768, %s22_s22, [#allocation3], %s3039_s24, %s3039_s24, %s3040_s25  }
   0xd   :  { %3034 = dma.done.wait [#allocation3], 32768  }
   0xe   :  { %3035 = vsyncadd [#allocation3], 4294934528  ;;  %v2592_v0 = vld [vmem:[#allocation2 + $0xe4] ss:$16 sps:$4 sm:$0xff]   ;;  %v2596_v2 = vld [vmem:[#allocation2 + $0xe0] ss:$16 sps:$4 sm:$0xff]  }
   0xf   :  { %v2594_v1 = vld [vmem:[#allocation2 + $0x2e4] ss:$16 sps:$4 sm:$0xff]   ;;  %1627 = vmatprep.subr.bf16.mxu0 %v2592_v0  ;;  %v2597_v3 = vld [vmem:[#allocation2 + $0x2e0] ss:$16 sps:$4 sm:$0xff]   ;;  %v38_v48 = vld [vmem:[%s3361_s0 + $0x8] sm:$0xff]  ;;  %vm2182_vm3 = vcmask 15360  }
  0x10   :  { %1668 = vmatprep.subr.bf16.mxu1 %v2594_v1  ;;  %v2598_v4 = vld [vmem:[#allocation2 + $0xc4] ss:$16 sps:$4 sm:$0xff]   ;;  %1628 = vmatpush1.bf16.msra.mxu0 %v2596_v2  ;;  %v2602_v6 = vld [vmem:[#allocation2 + $0xc0] ss:$16 sps:$4 sm:$0xff]   ;;  %v3089_v51 = vcombine.high %v38_v48, %v38_v48  ;;  %vm2217_vm4 = vcmask 7168  }
  0x11   :  { %1669 = vmatpush1.bf16.msra.mxu1 %v2597_v3  ;;  %v2600_v5 = vld [vmem:[#allocation2 + $0x2c4] ss:$16 sps:$4 sm:$0xff]   ;;  %1629 = vmatprep.subr.bf16.mxu0 %v2598_v4  ;;  %v2603_v7 = vld [vmem:[#allocation2 + $0x2c0] ss:$16 sps:$4 sm:$0xff]  }
  0x12   :  { %1670 = vmatprep.subr.bf16.mxu1 %v2600_v5  ;;  %v2604_v8 = vld [vmem:[#allocation2 + $0xa4] ss:$16 sps:$4 sm:$0xff]   ;;  %v2608_v10 = vld [vmem:[#allocation2 + $0xa0] ss:$16 sps:$4 sm:$0xff]   ;;  %1700 = vmatprep.mubr.bf16.mxu1 %v3089_v51 }
  0x13   :  { %v2606_v9 = vld [vmem:[#allocation2 + $0x2a4] ss:$16 sps:$4 sm:$0xff]   ;;  %v2609_v11 = vld [vmem:[#allocation2 + $0x2a0] ss:$16 sps:$4 sm:$0xff]  }
  0x14   :  { %1630 = vmatpush1.bf16.msra.mxu0 %v2602_v6  ;;  %v2610_v12 = vld [vmem:[#allocation2 + $0x84] ss:$16 sps:$4 sm:$0xff]   ;;  %v2614_v14 = vld [vmem:[#allocation2 + $0x80] ss:$16 sps:$4 sm:$0xff]  }
  0x15   :  { %1671 = vmatpush1.bf16.msra.mxu1 %v2603_v7  ;;  %1631 = vmatprep.subr.bf16.mxu0 %v2604_v8  ;;  %v2612_v13 = vld [vmem:[#allocation2 + $0x284] ss:$16 sps:$4 sm:$0xff]   ;;  %v2615_v15 = vld [vmem:[#allocation2 + $0x280] ss:$16 sps:$4 sm:$0xff]   ;;  %v3095_v7 = vcombine.low %v38_v48, %v38_v48 }
  0x16   :  { %1672 = vmatprep.subr.bf16.mxu1 %v2606_v9  ;;  %v2616_v16 = vld [vmem:[#allocation2 + $0x64] ss:$16 sps:$4 sm:$0xff]   ;;  %v2620_v18 = vld [vmem:[#allocation2 + $0x60] ss:$16 sps:$4 sm:$0xff]  }
  0x17   :  { %v2618_v17 = vld [vmem:[#allocation2 + $0x264] ss:$16 sps:$4 sm:$0xff]   ;;  %v2621_v19 = vld [vmem:[#allocation2 + $0x260] ss:$16 sps:$4 sm:$0xff]  }
  0x18   :  { %1632 = vmatpush1.bf16.msra.mxu0 %v2608_v10  ;;  %v2622_v20 = vld [vmem:[#allocation2 + $0x44] ss:$16 sps:$4 sm:$0xff]   ;;  %v2626_v22 = vld [vmem:[#allocation2 + $0x40] ss:$16 sps:$4 sm:$0xff]  }
  0x19   :  { %1673 = vmatpush1.bf16.msra.mxu1 %v2609_v11  ;;  %1633 = vmatprep.subr.bf16.mxu0 %v2610_v12  ;;  %v2624_v21 = vld [vmem:[#allocation2 + $0x244] ss:$16 sps:$4 sm:$0xff]   ;;  %v2627_v23 = vld [vmem:[#allocation2 + $0x240] ss:$16 sps:$4 sm:$0xff]  }
  0x1a   :  { %1674 = vmatprep.subr.bf16.mxu1 %v2612_v13  ;;  %v2628_v24 = vld [vmem:[#allocation2 + $0x24] ss:$16 sps:$4 sm:$0xff]   ;;  %v2632_v26 = vld [vmem:[#allocation2 + $0x20] ss:$16 sps:$4 sm:$0xff]  }
  0x1b   :  { %v2630_v25 = vld [vmem:[#allocation2 + $0x224] ss:$16 sps:$4 sm:$0xff]   ;;  %v2633_v27 = vld [vmem:[#allocation2 + $0x220] ss:$16 sps:$4 sm:$0xff]  }
  0x1c   :  { %1634 = vmatpush1.bf16.msra.mxu0 %v2614_v14  ;;  %v2634_v28 = vld [vmem:[#allocation2 + $0x4] ss:$16 sps:$4 sm:$0xff]   ;;  %v2638_v30 = vld [vmem:[#allocation2] ss:$16 sps:$4 sm:$0xff]  }
  0x1d   :  { %1675 = vmatpush1.bf16.msra.mxu1 %v2615_v15  ;;  %1635 = vmatprep.subr.bf16.mxu0 %v2616_v16  ;;  %v2636_v29 = vld [vmem:[#allocation2 + $0x204] ss:$16 sps:$4 sm:$0xff]   ;;  %v2639_v31 = vld [vmem:[#allocation2 + $0x200] ss:$16 sps:$4 sm:$0xff]  }
  0x1e   :  { %1676 = vmatprep.subr.bf16.mxu1 %v2618_v17  ;;  %v2640_v32 = vld [vmem:[#allocation2 + $0x1e4] ss:$16 sps:$4 sm:$0xff]   ;;  %v2644_v34 = vld [vmem:[#allocation2 + $0x1e0] ss:$16 sps:$4 sm:$0xff]  }
  0x1f   :  { %v2642_v33 = vld [vmem:[#allocation2 + $0x3e4] ss:$16 sps:$4 sm:$0xff]   ;;  %v2645_v35 = vld [vmem:[#allocation2 + $0x3e0] ss:$16 sps:$4 sm:$0xff]  }
  0x20   :  { %1636 = vmatpush1.bf16.msra.mxu0 %v2620_v18  ;;  %v2646_v36 = vld [vmem:[#allocation2 + $0x1c4] ss:$16 sps:$4 sm:$0xff]   ;;  %v2650_v38 = vld [vmem:[#allocation2 + $0x1c0] ss:$16 sps:$4 sm:$0xff]  }
  0x21   :  { %1677 = vmatpush1.bf16.msra.mxu1 %v2621_v19  ;;  %1637 = vmatprep.subr.bf16.mxu0 %v2622_v20  ;;  %v2648_v37 = vld [vmem:[#allocation2 + $0x3c4] ss:$16 sps:$4 sm:$0xff]   ;;  %v2651_v39 = vld [vmem:[#allocation2 + $0x3c0] ss:$16 sps:$4 sm:$0xff]  }
  0x22   :  { %1678 = vmatprep.subr.bf16.mxu1 %v2624_v21  ;;  %v2652_v40 = vld [vmem:[#allocation2 + $0x1a4] ss:$16 sps:$4 sm:$0xff]   ;;  %v2656_v42 = vld [vmem:[#allocation2 + $0x1a0] ss:$16 sps:$4 sm:$0xff]  }
  0x23   :  { %v2654_v41 = vld [vmem:[#allocation2 + $0x3a4] ss:$16 sps:$4 sm:$0xff]   ;;  %v2657_v43 = vld [vmem:[#allocation2 + $0x3a0] ss:$16 sps:$4 sm:$0xff]  }
  0x24   :  { %1638 = vmatpush1.bf16.msra.mxu0 %v2626_v22  ;;  %v2658_v44 = vld [vmem:[#allocation2 + $0x184] ss:$16 sps:$4 sm:$0xff]   ;;  %v2662_v49 = vld [vmem:[#allocation2 + $0x180] ss:$16 sps:$4 sm:$0xff]  }
  0x25   :  { %1679 = vmatpush1.bf16.msra.mxu1 %v2627_v23  ;;  %1639 = vmatprep.subr.bf16.mxu0 %v2628_v24  ;;  %v2660_v45 = vld [vmem:[#allocation2 + $0x384] ss:$16 sps:$4 sm:$0xff]   ;;  %v2663_v50 = vld [vmem:[#allocation2 + $0x380] ss:$16 sps:$4 sm:$0xff]  }
  0x26   :  { %1680 = vmatprep.subr.bf16.mxu1 %v2630_v25  ;;  %v37_v46 = vld [vmem:[%s3361_s0] sm:$0xff] }
  0x27   :  { %v3084_v47 = vcombine.high %v37_v46, %v37_v46  ;;  %v2664_v52 = vld [vmem:[#allocation2 + $0x164] ss:$16 sps:$4 sm:$0xff]   ;;  %v2668_v54 = vld [vmem:[#allocation2 + $0x160] ss:$16 sps:$4 sm:$0xff]   ;;  %v3093_v6 = vcombine.low %v37_v46, %v37_v46 }
  0x28   :  { %1640 = vmatpush1.bf16.msra.mxu0 %v2632_v26  ;;  %v2666_v53 = vld [vmem:[#allocation2 + $0x364] ss:$16 sps:$4 sm:$0xff]   ;;  %v2669_v55 = vld [vmem:[#allocation2 + $0x360] ss:$16 sps:$4 sm:$0xff]  }
  0x29   :  { %1681 = vmatpush1.bf16.msra.mxu1 %v2633_v27  ;;  %1641 = vmatprep.subr.bf16.mxu0 %v2634_v28  ;;  %v2670_v56 = vld [vmem:[#allocation2 + $0x144] ss:$16 sps:$4 sm:$0xff]   ;;  %v2674_v58 = vld [vmem:[#allocation2 + $0x140] ss:$16 sps:$4 sm:$0xff]  }
  0x2a   :  { %1682 = vmatprep.subr.bf16.mxu1 %v2636_v29  ;;  %1659 = vmatprep.mubr.bf16.mxu0 %v3084_v47  ;;  %v2672_v57 = vld [vmem:[#allocation2 + $0x344] ss:$16 sps:$4 sm:$0xff]   ;;  %v2675_v59 = vld [vmem:[#allocation2 + $0x340] ss:$16 sps:$4 sm:$0xff]  }
  0x2b   :  { %v2676_v60 = vld [vmem:[#allocation2 + $0x124] ss:$16 sps:$4 sm:$0xff]   ;;  %v2680_v62 = vld [vmem:[#allocation2 + $0x120] ss:$16 sps:$4 sm:$0xff]  }
  0x2c   :  { %1642 = vmatpush1.bf16.msra.mxu0 %v2638_v30  ;;  %v2678_v61 = vld [vmem:[#allocation2 + $0x324] ss:$16 sps:$4 sm:$0xff]   ;;  %v2681_v63 = vld [vmem:[#allocation2 + $0x320] ss:$16 sps:$4 sm:$0xff]  }
  0x2d   :  { %1683 = vmatpush1.bf16.msra.mxu1 %v2639_v31  ;;  %1643 = vmatprep.subr.bf16.mxu0 %v2640_v32  ;;  %v2682_v0 = vld [vmem:[#allocation2 + $0x104] ss:$16 sps:$4 sm:$0xff]   ;;  %v2686_v2 = vld [vmem:[#allocation2 + $0x100] ss:$16 sps:$4 sm:$0xff]  }
  0x2e   :  { %1684 = vmatprep.subr.bf16.mxu1 %v2642_v33  ;;  %v2684_v1 = vld [vmem:[#allocation2 + $0x304] ss:$16 sps:$4 sm:$0xff]   ;;  %v2687_v3 = vld [vmem:[#allocation2 + $0x300] ss:$16 sps:$4 sm:$0xff]   ;;  %v3107_v33 = vld [vmem:[%s3361_s0 + $0x18] sm:$0xff] }
  0x2f   :  { %v2694_v4 = vld [vmem:[#allocation2 + $0x4e4] ss:$16 sps:$4 sm:$0xff]   ;;  %v2692_v8 = vld [vmem:[#allocation2 + $0x4e0] ss:$16 sps:$4 sm:$0xff]  }
  0x30   :  { %1644 = vmatpush2.bf16.msra.mxu0 %v2644_v34  ;;  %v2697_v5 = vld [vmem:[#allocation2 + $0x6e4] ss:$16 sps:$4 sm:$0xff]   ;;  %v2695_v9 = vld [vmem:[#allocation2 + $0x6e0] ss:$16 sps:$4 sm:$0xff]  }
  0x31   :  { %1685 = vmatpush2.bf16.msra.mxu1 %v2645_v35  ;;  %1645 = vmatprep.subr.bf16.mxu0 %v2646_v36  ;;  %v2700_v10 = vld [vmem:[#allocation2 + $0x4c4] ss:$16 sps:$4 sm:$0xff]   ;;  %v2698_v12 = vld [vmem:[#allocation2 + $0x4c0] ss:$16 sps:$4 sm:$0xff]  }
  0x32   :  { %1686 = vmatprep.subr.bf16.mxu1 %v2648_v37  ;;  %v2703_v11 = vld [vmem:[#allocation2 + $0x6c4] ss:$16 sps:$4 sm:$0xff]   ;;  %v2701_v13 = vld [vmem:[#allocation2 + $0x6c0] ss:$16 sps:$4 sm:$0xff]   ;;  %v3115_v37 = vcombine.high %v3107_v33, %v3107_v33 }
  0x33   :  { %v2706_v14 = vld [vmem:[#allocation2 + $0x4a4] ss:$16 sps:$4 sm:$0xff]   ;;  %v2704_v16 = vld [vmem:[#allocation2 + $0x4a0] ss:$16 sps:$4 sm:$0xff]  }
  0x34   :  { %1646 = vmatpush2.bf16.msra.mxu0 %v2650_v38  ;;  %v2709_v15 = vld [vmem:[#allocation2 + $0x6a4] ss:$16 sps:$4 sm:$0xff]   ;;  %v2707_v17 = vld [vmem:[#allocation2 + $0x6a0] ss:$16 sps:$4 sm:$0xff]  }
  0x35   :  { %1687 = vmatpush2.bf16.msra.mxu1 %v2651_v39  ;;  %1647 = vmatprep.subr.bf16.mxu0 %v2652_v40  ;;  %v2712_v18 = vld [vmem:[#allocation2 + $0x484] ss:$16 sps:$4 sm:$0xff]   ;;  %v2710_v20 = vld [vmem:[#allocation2 + $0x480] ss:$16 sps:$4 sm:$0xff]  }
  0x36   :  { %1688 = vmatprep.subr.bf16.mxu1 %v2654_v41  ;;  %v2715_v19 = vld [vmem:[#allocation2 + $0x684] ss:$16 sps:$4 sm:$0xff]   ;;  %v2713_v21 = vld [vmem:[#allocation2 + $0x680] ss:$16 sps:$4 sm:$0xff]  }
  0x37   :  { %v2718_v22 = vld [vmem:[#allocation2 + $0x464] ss:$16 sps:$4 sm:$0xff]   ;;  %v2716_v24 = vld [vmem:[#allocation2 + $0x460] ss:$16 sps:$4 sm:$0xff]  }
  0x38   :  { %1648 = vmatpush2.bf16.msra.mxu0 %v2656_v42  ;;  %v2721_v23 = vld [vmem:[#allocation2 + $0x664] ss:$16 sps:$4 sm:$0xff]   ;;  %v2719_v25 = vld [vmem:[#allocation2 + $0x660] ss:$16 sps:$4 sm:$0xff]  }
  0x39   :  { %1689 = vmatpush2.bf16.msra.mxu1 %v2657_v43  ;;  %1649 = vmatprep.subr.bf16.mxu0 %v2658_v44  ;;  %v2724_v26 = vld [vmem:[#allocation2 + $0x444] ss:$16 sps:$4 sm:$0xff]   ;;  %v2722_v28 = vld [vmem:[#allocation2 + $0x440] ss:$16 sps:$4 sm:$0xff]  }
  0x3a   :  { %1690 = vmatprep.subr.bf16.mxu1 %v2660_v45  ;;  %v2727_v27 = vld [vmem:[#allocation2 + $0x644] ss:$16 sps:$4 sm:$0xff]   ;;  %v2725_v29 = vld [vmem:[#allocation2 + $0x640] ss:$16 sps:$4 sm:$0xff]  }
  0x3b   :  { %v2730_v30 = vld [vmem:[#allocation2 + $0x424] ss:$16 sps:$4 sm:$0xff]   ;;  %v2728_v34 = vld [vmem:[#allocation2 + $0x420] ss:$16 sps:$4 sm:$0xff]  }
  0x3c   :  { %1650 = vmatpush2.bf16.msra.mxu0 %v2662_v49  ;;  %v2733_v31 = vld [vmem:[#allocation2 + $0x624] ss:$16 sps:$4 sm:$0xff]   ;;  %v2731_v35 = vld [vmem:[#allocation2 + $0x620] ss:$16 sps:$4 sm:$0xff]  }
  0x3d   :  { %1691 = vmatpush2.bf16.msra.mxu1 %v2663_v50  ;;  %1651 = vmatprep.subr.bf16.mxu0 %v2664_v52  ;;  %v3102_v32 = vld [vmem:[%s3361_s0 + $0x10] sm:$0xff] }
  0x3e   :  { %1692 = vmatprep.subr.bf16.mxu1 %v2666_v53  ;;  %v3111_v36 = vcombine.high %v3102_v32, %v3102_v32  ;;  %v2736_v38 = vld [vmem:[#allocation2 + $0x404] ss:$16 sps:$4 sm:$0xff]   ;;  %v2734_v40 = vld [vmem:[#allocation2 + $0x400] ss:$16 sps:$4 sm:$0xff]  }
  0x3f   :  { %v2739_v39 = vld [vmem:[#allocation2 + $0x604] ss:$16 sps:$4 sm:$0xff]   ;;  %v2737_v41 = vld [vmem:[#allocation2 + $0x600] ss:$16 sps:$4 sm:$0xff]  }
  0x40   :  { %1652 = vmatpush2.bf16.msra.mxu0 %v2668_v54  ;;  %v2742_v42 = vld [vmem:[#allocation2 + $0x5e4] ss:$16 sps:$4 sm:$0xff]   ;;  %v2740_v44 = vld [vmem:[#allocation2 + $0x5e0] ss:$16 sps:$4 sm:$0xff]  }
  0x41   :  { %1693 = vmatpush2.bf16.msra.mxu1 %v2669_v55  ;;  %1653 = vmatprep.subr.bf16.mxu0 %v2670_v56  ;;  %v2745_v43 = vld [vmem:[#allocation2 + $0x7e4] ss:$16 sps:$4 sm:$0xff]   ;;  %v2743_v45 = vld [vmem:[#allocation2 + $0x7e0] ss:$16 sps:$4 sm:$0xff]  }
  0x42   :  { %1694 = vmatprep.subr.bf16.mxu1 %v2672_v57  ;;  %v2748_v46 = vld [vmem:[#allocation2 + $0x5c4] ss:$16 sps:$4 sm:$0xff]   ;;  %v2746_v49 = vld [vmem:[#allocation2 + $0x5c0] ss:$16 sps:$4 sm:$0xff]  }
  0x43   :  { %v2751_v48 = vld [vmem:[#allocation2 + $0x7c4] ss:$16 sps:$4 sm:$0xff]   ;;  %v2749_v50 = vld [vmem:[#allocation2 + $0x7c0] ss:$16 sps:$4 sm:$0xff]  }
  0x44   :  { %1654 = vmatpush2.bf16.msra.mxu0 %v2674_v58  ;;  %v2754_v52 = vld [vmem:[#allocation2 + $0x5a4] ss:$16 sps:$4 sm:$0xff]   ;;  %v2752_v54 = vld [vmem:[#allocation2 + $0x5a0] ss:$16 sps:$4 sm:$0xff]  }
  0x45   :  { %1695 = vmatpush2.bf16.msra.mxu1 %v2675_v59  ;;  %1655 = vmatprep.subr.bf16.mxu0 %v2676_v60  ;;  %v2757_v53 = vld [vmem:[#allocation2 + $0x7a4] ss:$16 sps:$4 sm:$0xff]   ;;  %v2755_v55 = vld [vmem:[#allocation2 + $0x7a0] ss:$16 sps:$4 sm:$0xff]  }
  0x46   :  { %1696 = vmatprep.subr.bf16.mxu1 %v2678_v61  ;;  %v2760_v56 = vld [vmem:[#allocation2 + $0x584] ss:$16 sps:$4 sm:$0xff]   ;;  %v2758_v58 = vld [vmem:[#allocation2 + $0x580] ss:$16 sps:$4 sm:$0xff]  }
  0x47   :  { %v2763_v57 = vld [vmem:[#allocation2 + $0x784] ss:$16 sps:$4 sm:$0xff]   ;;  %v2761_v59 = vld [vmem:[#allocation2 + $0x780] ss:$16 sps:$4 sm:$0xff]  }
  0x48   :  { %1656 = vmatpush2.bf16.msra.mxu0 %v2680_v62  ;;  %v2766_v60 = vld [vmem:[#allocation2 + $0x564] ss:$16 sps:$4 sm:$0xff]   ;;  %v2764_v62 = vld [vmem:[#allocation2 + $0x560] ss:$16 sps:$4 sm:$0xff]  }
  0x49   :  { %1697 = vmatpush2.bf16.msra.mxu1 %v2681_v63  ;;  %1657 = vmatprep.subr.bf16.mxu0 %v2682_v0  ;;  %v2769_v61 = vld [vmem:[#allocation2 + $0x764] ss:$16 sps:$4 sm:$0xff]   ;;  %v2767_v63 = vld [vmem:[#allocation2 + $0x760] ss:$16 sps:$4 sm:$0xff]  }
  0x4a   :  { %1698 = vmatprep.subr.bf16.mxu1 %v2684_v1  ;;  %v2772_v0 = vld [vmem:[#allocation2 + $0x544] ss:$16 sps:$4 sm:$0xff]  }
  0x4b   :  { %v2775_v1 = vld [vmem:[#allocation2 + $0x744] ss:$16 sps:$4 sm:$0xff]  }
  0x4c   :  { %1658 = vmatpush2.bf16.msra.mxu0 %v2686_v2  ;;  %v2770_v2 = vld [vmem:[#allocation2 + $0x540] ss:$16 sps:$4 sm:$0xff]  }
  0x4d   :  { %1699 = vmatpush2.bf16.msra.mxu1 %v2687_v3  ;;  %1709 = vmatprep.subr.bf16.mxu0 %v2694_v4  ;;  %v2773_v3 = vld [vmem:[#allocation2 + $0x740] ss:$16 sps:$4 sm:$0xff]   ;;  %v2778_v4 = vld [vmem:[#allocation2 + $0x524] ss:$16 sps:$4 sm:$0xff]  }
  0x4e   :  { %1750 = vmatprep.subr.bf16.mxu1 %v2697_v5  ;;  %v2781_v5 = vld [vmem:[#allocation2 + $0x724] ss:$16 sps:$4 sm:$0xff]  }
  0x4f   :  { %1660 = vmatmul.mubr.bf16.vlgmr.msra.gmra.mxu0 %v3093_v6 }
  0x50   :  { %1701 = vmatmul.mubr.bf16.vlgmr.msra.gmra.mxu1 %v3095_v7  ;;  %1710 = vmatpush1.bf16.msra.mxu0 %v2692_v8  ;;  %v2776_v8 = vld [vmem:[#allocation2 + $0x520] ss:$16 sps:$4 sm:$0xff]  }
  0x51   :  { %1751 = vmatpush1.bf16.msra.mxu1 %v2695_v9  ;;  %1711 = vmatprep.subr.bf16.mxu0 %v2700_v10  ;;  %v2779_v9 = vld [vmem:[#allocation2 + $0x720] ss:$16 sps:$4 sm:$0xff]   ;;  %v2784_v10 = vld [vmem:[#allocation2 + $0x504] ss:$16 sps:$4 sm:$0xff]  }
  0x52   :  { %1752 = vmatprep.subr.bf16.mxu1 %v2703_v11  ;;  %1741 = vmatprep.mubr.bf16.mxu0 %v3111_v36  ;;  %v2787_v11 = vld [vmem:[#allocation2 + $0x704] ss:$16 sps:$4 sm:$0xff]  }
  0x53   :  { %1782 = vmatprep.mubr.bf16.mxu1 %v3115_v37 }
  0x54   :  { %1712 = vmatpush1.bf16.msra.mxu0 %v2698_v12  ;;  %v2782_v12 = vld [vmem:[#allocation2 + $0x500] ss:$16 sps:$4 sm:$0xff]  }
  0x55   :  { %1753 = vmatpush1.bf16.msra.mxu1 %v2701_v13  ;;  %1713 = vmatprep.subr.bf16.mxu0 %v2706_v14  ;;  %v2785_v13 = vld [vmem:[#allocation2 + $0x700] ss:$16 sps:$4 sm:$0xff]   ;;  %v2794_v14 = vld [vmem:[#allocation2 + $0xec] ss:$16 sps:$4 sm:$0xff]  }
  0x56   :  { %1754 = vmatprep.subr.bf16.mxu1 %v2709_v15  ;;  %v2797_v15 = vld [vmem:[#allocation2 + $0x2ec] ss:$16 sps:$4 sm:$0xff]  }
  0x58   :  { %1714 = vmatpush1.bf16.msra.mxu0 %v2704_v16  ;;  %v3121_v16 = vcombine.low %v3102_v32, %v3102_v32  ;;  %v2818_v32 = vld [vmem:[#allocation2 + $0x6c] ss:$16 sps:$4 sm:$0xff]  }
  0x59   :  { %1755 = vmatpush1.bf16.msra.mxu1 %v2707_v17  ;;  %1715 = vmatprep.subr.bf16.mxu0 %v2712_v18  ;;  %v3125_v17 = vcombine.low %v3107_v33, %v3107_v33  ;;  %v2792_v18 = vld [vmem:[#allocation2 + $0xe8] ss:$16 sps:$4 sm:$0xff]   ;;  %v2821_v33 = vld [vmem:[#allocation2 + $0x26c] ss:$16 sps:$4 sm:$0xff]  }
  0x5a   :  { %1756 = vmatprep.subr.bf16.mxu1 %v2715_v19  ;;  %v2795_v19 = vld [vmem:[#allocation2 + $0x2e8] ss:$16 sps:$4 sm:$0xff]  }
  0x5c   :  { %1716 = vmatpush1.bf16.msra.mxu0 %v2710_v20  ;;  %v2800_v20 = vld [vmem:[#allocation2 + $0xcc] ss:$16 sps:$4 sm:$0xff]  }
  0x5d   :  { %1757 = vmatpush1.bf16.msra.mxu1 %v2713_v21  ;;  %1717 = vmatprep.subr.bf16.mxu0 %v2718_v22  ;;  %v2803_v21 = vld [vmem:[#allocation2 + $0x2cc] ss:$16 sps:$4 sm:$0xff]   ;;  %v2798_v22 = vld [vmem:[#allocation2 + $0xc8] ss:$16 sps:$4 sm:$0xff]  }
  0x5e   :  { %1758 = vmatprep.subr.bf16.mxu1 %v2721_v23  ;;  %v2801_v23 = vld [vmem:[#allocation2 + $0x2c8] ss:$16 sps:$4 sm:$0xff]  }
  0x60   :  { %1718 = vmatpush1.bf16.msra.mxu0 %v2716_v24  ;;  %v2806_v24 = vld [vmem:[#allocation2 + $0xac] ss:$16 sps:$4 sm:$0xff]  }
  0x61   :  { %1759 = vmatpush1.bf16.msra.mxu1 %v2719_v25  ;;  %1719 = vmatprep.subr.bf16.mxu0 %v2724_v26  ;;  %v2809_v25 = vld [vmem:[#allocation2 + $0x2ac] ss:$16 sps:$4 sm:$0xff]   ;;  %v2804_v26 = vld [vmem:[#allocation2 + $0xa8] ss:$16 sps:$4 sm:$0xff]  }
  0x62   :  { %1760 = vmatprep.subr.bf16.mxu1 %v2727_v27  ;;  %v2807_v27 = vld [vmem:[#allocation2 + $0x2a8] ss:$16 sps:$4 sm:$0xff]  }
  0x64   :  { %1720 = vmatpush1.bf16.msra.mxu0 %v2722_v28  ;;  %v2812_v28 = vld [vmem:[#allocation2 + $0x8c] ss:$16 sps:$4 sm:$0xff]  }
  0x65   :  { %1761 = vmatpush1.bf16.msra.mxu1 %v2725_v29  ;;  %1721 = vmatprep.subr.bf16.mxu0 %v2730_v30  ;;  %v2815_v29 = vld [vmem:[#allocation2 + $0x28c] ss:$16 sps:$4 sm:$0xff]   ;;  %v2810_v30 = vld [vmem:[#allocation2 + $0x88] ss:$16 sps:$4 sm:$0xff]  }
  0x66   :  { %1762 = vmatprep.subr.bf16.mxu1 %v2733_v31  ;;  %v2813_v31 = vld [vmem:[#allocation2 + $0x288] ss:$16 sps:$4 sm:$0xff]  }
  0x68   :  { %1722 = vmatpush1.bf16.msra.mxu0 %v2728_v34  ;;  %v2816_v34 = vld [vmem:[#allocation2 + $0x68] ss:$16 sps:$4 sm:$0xff]  }
  0x69   :  { %1763 = vmatpush1.bf16.msra.mxu1 %v2731_v35  ;;  %1723 = vmatprep.subr.bf16.mxu0 %v2736_v38  ;;  %v2827_v35 = vld [vmem:[#allocation2 + $0x24c] ss:$16 sps:$4 sm:$0xff]   ;;  %v2822_v38 = vld [vmem:[#allocation2 + $0x48] ss:$16 sps:$4 sm:$0xff]  }
  0x6a   :  { %1764 = vmatprep.subr.bf16.mxu1 %v2739_v39  ;;  %v2825_v39 = vld [vmem:[#allocation2 + $0x248] ss:$16 sps:$4 sm:$0xff]  }
  0x6c   :  { %1724 = vmatpush1.bf16.msra.mxu0 %v2734_v40  ;;  %v2830_v40 = vld [vmem:[#allocation2 + $0x2c] ss:$16 sps:$4 sm:$0xff]  }
  0x6d   :  { %1765 = vmatpush1.bf16.msra.mxu1 %v2737_v41  ;;  %1725 = vmatprep.subr.bf16.mxu0 %v2742_v42  ;;  %v2833_v41 = vld [vmem:[#allocation2 + $0x22c] ss:$16 sps:$4 sm:$0xff]   ;;  %v2828_v42 = vld [vmem:[#allocation2 + $0x28] ss:$16 sps:$4 sm:$0xff]  }
  0x6e   :  { %1766 = vmatprep.subr.bf16.mxu1 %v2745_v43  ;;  %v2831_v43 = vld [vmem:[#allocation2 + $0x228] ss:$16 sps:$4 sm:$0xff]  }
  0x70   :  { %1726 = vmatpush2.bf16.msra.mxu0 %v2740_v44  ;;  %v2836_v44 = vld [vmem:[#allocation2 + $0xc] ss:$16 sps:$4 sm:$0xff]  }
  0x71   :  { %1767 = vmatpush2.bf16.msra.mxu1 %v2743_v45  ;;  %1727 = vmatprep.subr.bf16.mxu0 %v2748_v46  ;;  %v2839_v45 = vld [vmem:[#allocation2 + $0x20c] ss:$16 sps:$4 sm:$0xff]   ;;  %v2834_v46 = vld [vmem:[#allocation2 + $0x8] ss:$16 sps:$4 sm:$0xff]  }
  0x72   :  { %1768 = vmatprep.subr.bf16.mxu1 %v2751_v48  ;;  %v2837_v48 = vld [vmem:[#allocation2 + $0x208] ss:$16 sps:$4 sm:$0xff]  }
  0x74   :  { %1728 = vmatpush2.bf16.msra.mxu0 %v2746_v49  ;;  %v2842_v49 = vld [vmem:[#allocation2 + $0x1ec] ss:$16 sps:$4 sm:$0xff]  }
  0x75   :  { %1769 = vmatpush2.bf16.msra.mxu1 %v2749_v50  ;;  %1729 = vmatprep.subr.bf16.mxu0 %v2754_v52  ;;  %v2845_v50 = vld [vmem:[#allocation2 + $0x3ec] ss:$16 sps:$4 sm:$0xff]   ;;  %v2840_v52 = vld [vmem:[#allocation2 + $0x1e8] ss:$16 sps:$4 sm:$0xff]  }
  0x76   :  { %1770 = vmatprep.subr.bf16.mxu1 %v2757_v53  ;;  %v2843_v53 = vld [vmem:[#allocation2 + $0x3e8] ss:$16 sps:$4 sm:$0xff]  }
  0x78   :  { %1730 = vmatpush2.bf16.msra.mxu0 %v2752_v54  ;;  %v2848_v54 = vld [vmem:[#allocation2 + $0x1cc] ss:$16 sps:$4 sm:$0xff]  }
  0x79   :  { %1771 = vmatpush2.bf16.msra.mxu1 %v2755_v55  ;;  %1731 = vmatprep.subr.bf16.mxu0 %v2760_v56  ;;  %v2851_v55 = vld [vmem:[#allocation2 + $0x3cc] ss:$16 sps:$4 sm:$0xff]   ;;  %v2846_v56 = vld [vmem:[#allocation2 + $0x1c8] ss:$16 sps:$4 sm:$0xff]  }
  0x7a   :  { %1772 = vmatprep.subr.bf16.mxu1 %v2763_v57  ;;  %v2849_v57 = vld [vmem:[#allocation2 + $0x3c8] ss:$16 sps:$4 sm:$0xff]  }
  0x7c   :  { %1732 = vmatpush2.bf16.msra.mxu0 %v2758_v58  ;;  %v2854_v58 = vld [vmem:[#allocation2 + $0x1ac] ss:$16 sps:$4 sm:$0xff]  }
  0x7d   :  { %1773 = vmatpush2.bf16.msra.mxu1 %v2761_v59  ;;  %1733 = vmatprep.subr.bf16.mxu0 %v2766_v60  ;;  %v2857_v59 = vld [vmem:[#allocation2 + $0x3ac] ss:$16 sps:$4 sm:$0xff]   ;;  %v2852_v60 = vld [vmem:[#allocation2 + $0x1a8] ss:$16 sps:$4 sm:$0xff]  }
  0x7e   :  { %1774 = vmatprep.subr.bf16.mxu1 %v2769_v61  ;;  %v2855_v61 = vld [vmem:[#allocation2 + $0x3a8] ss:$16 sps:$4 sm:$0xff]  }
  0x80   :  { %1734 = vmatpush2.bf16.msra.mxu0 %v2764_v62  ;;  %v2860_v62 = vld [vmem:[#allocation2 + $0x18c] ss:$16 sps:$4 sm:$0xff]  }
  0x81   :  { %1775 = vmatpush2.bf16.msra.mxu1 %v2767_v63  ;;  %1735 = vmatprep.subr.bf16.mxu0 %v2772_v0  ;;  %v2863_v63 = vld [vmem:[#allocation2 + $0x38c] ss:$16 sps:$4 sm:$0xff]   ;;  %v2858_v0 = vld [vmem:[#allocation2 + $0x188] ss:$16 sps:$4 sm:$0xff]  }
  0x82   :  { %1776 = vmatprep.subr.bf16.mxu1 %v2775_v1  ;;  %v2861_v1 = vld [vmem:[#allocation2 + $0x388] ss:$16 sps:$4 sm:$0xff]  }
  0x84   :  { %1736 = vmatpush2.bf16.msra.mxu0 %v2770_v2  ;;  %v2866_v2 = vld [vmem:[#allocation2 + $0x16c] ss:$16 sps:$4 sm:$0xff]  }
  0x85   :  { %1777 = vmatpush2.bf16.msra.mxu1 %v2773_v3  ;;  %1737 = vmatprep.subr.bf16.mxu0 %v2778_v4  ;;  %v2869_v3 = vld [vmem:[#allocation2 + $0x36c] ss:$16 sps:$4 sm:$0xff]   ;;  %v2864_v4 = vld [vmem:[#allocation2 + $0x168] ss:$16 sps:$4 sm:$0xff]  }
  0x86   :  { %1778 = vmatprep.subr.bf16.mxu1 %v2781_v5  ;;  %v2867_v5 = vld [vmem:[#allocation2 + $0x368] ss:$16 sps:$4 sm:$0xff]  }
  0x88   :  { %1738 = vmatpush2.bf16.msra.mxu0 %v2776_v8  ;;  %v2872_v8 = vld [vmem:[#allocation2 + $0x14c] ss:$16 sps:$4 sm:$0xff]  }
  0x89   :  { %1779 = vmatpush2.bf16.msra.mxu1 %v2779_v9  ;;  %1739 = vmatprep.subr.bf16.mxu0 %v2784_v10  ;;  %v2875_v9 = vld [vmem:[#allocation2 + $0x34c] ss:$16 sps:$4 sm:$0xff]   ;;  %v2870_v10 = vld [vmem:[#allocation2 + $0x148] ss:$16 sps:$4 sm:$0xff]  }
  0x8a   :  { %1780 = vmatprep.subr.bf16.mxu1 %v2787_v11  ;;  %v2873_v11 = vld [vmem:[#allocation2 + $0x348] ss:$16 sps:$4 sm:$0xff]  }
  0x8c   :  { %1740 = vmatpush2.bf16.msra.mxu0 %v2782_v12  ;;  %v2878_v12 = vld [vmem:[#allocation2 + $0x12c] ss:$16 sps:$4 sm:$0xff]  }
  0x8d   :  { %1781 = vmatpush2.bf16.msra.mxu1 %v2785_v13  ;;  %1791 = vmatprep.subr.bf16.mxu0 %v2794_v14  ;;  %v2881_v13 = vld [vmem:[#allocation2 + $0x32c] ss:$16 sps:$4 sm:$0xff]   ;;  %v2876_v14 = vld [vmem:[#allocation2 + $0x128] ss:$16 sps:$4 sm:$0xff]  }
  0x8e   :  { %1832 = vmatprep.subr.bf16.mxu1 %v2797_v15  ;;  %v2879_v15 = vld [vmem:[#allocation2 + $0x328] ss:$16 sps:$4 sm:$0xff]  }
  0x8f   :  { %1742 = vmatmul.mubr.bf16.vlgmr.msra.gmra.mxu0 %v3121_v16 }
  0x90   :  { %1783 = vmatmul.mubr.bf16.vlgmr.msra.gmra.mxu1 %v3125_v17  ;;  %1792 = vmatpush1.bf16.msra.mxu0 %v2792_v18  ;;  %v2884_v18 = vld [vmem:[#allocation2 + $0x10c] ss:$16 sps:$4 sm:$0xff]  }
  0x91   :  { %1833 = vmatpush1.bf16.msra.mxu1 %v2795_v19  ;;  %1793 = vmatprep.subr.bf16.mxu0 %v2800_v20  ;;  %v2887_v19 = vld [vmem:[#allocation2 + $0x30c] ss:$16 sps:$4 sm:$0xff]   ;;  %v2882_v20 = vld [vmem:[#allocation2 + $0x108] ss:$16 sps:$4 sm:$0xff]  }
  0x92   :  { %1834 = vmatprep.subr.bf16.mxu1 %v2803_v21  ;;  %1823 = vmatprep.mubr.bf16.mxu0 %v3084_v47  ;;  %v2819_v47 = vld [vmem:[#allocation2 + $0x268] ss:$16 sps:$4 sm:$0xff]  }
  0x93   :  { %1864 = vmatprep.mubr.bf16.mxu1 %v3089_v51  ;;  %v2824_v51 = vld [vmem:[#allocation2 + $0x4c] ss:$16 sps:$4 sm:$0xff]   ;;  %v2885_v21 = vld [vmem:[#allocation2 + $0x308] ss:$16 sps:$4 sm:$0xff]  }
  0x94   :  { %1794 = vmatpush1.bf16.msra.mxu0 %v2798_v22  ;;  %v2890_v22 = vld [vmem:[#allocation2 + $0x4ec] ss:$16 sps:$4 sm:$0xff]  }
  0x95   :  { %1835 = vmatpush1.bf16.msra.mxu1 %v2801_v23  ;;  %1795 = vmatprep.subr.bf16.mxu0 %v2806_v24  ;;  %v2893_v23 = vld [vmem:[#allocation2 + $0x6ec] ss:$16 sps:$4 sm:$0xff]   ;;  %v2888_v24 = vld [vmem:[#allocation2 + $0x4e8] ss:$16 sps:$4 sm:$0xff]  }
  0x96   :  { %1836 = vmatprep.subr.bf16.mxu1 %v2809_v25  ;;  %v2891_v25 = vld [vmem:[#allocation2 + $0x6e8] ss:$16 sps:$4 sm:$0xff]  }
  0x98   :  { %1796 = vmatpush1.bf16.msra.mxu0 %v2804_v26  ;;  %v2896_v26 = vld [vmem:[#allocation2 + $0x4cc] ss:$16 sps:$4 sm:$0xff]  }
  0x99   :  { %1837 = vmatpush1.bf16.msra.mxu1 %v2807_v27  ;;  %1797 = vmatprep.subr.bf16.mxu0 %v2812_v28  ;;  %v2899_v27 = vld [vmem:[#allocation2 + $0x6cc] ss:$16 sps:$4 sm:$0xff]   ;;  %v2894_v28 = vld [vmem:[#allocation2 + $0x4c8] ss:$16 sps:$4 sm:$0xff]  }
  0x9a   :  { %1838 = vmatprep.subr.bf16.mxu1 %v2815_v29  ;;  %v2897_v29 = vld [vmem:[#allocation2 + $0x6c8] ss:$16 sps:$4 sm:$0xff]  }
  0x9c   :  { %1798 = vmatpush1.bf16.msra.mxu0 %v2810_v30  ;;  %v2902_v30 = vld [vmem:[#allocation2 + $0x4ac] ss:$16 sps:$4 sm:$0xff]  }
  0x9d   :  { %1839 = vmatpush1.bf16.msra.mxu1 %v2813_v31  ;;  %1799 = vmatprep.subr.bf16.mxu0 %v2818_v32  ;;  %v2905_v31 = vld [vmem:[#allocation2 + $0x6ac] ss:$16 sps:$4 sm:$0xff]   ;;  %v2900_v32 = vld [vmem:[#allocation2 + $0x4a8] ss:$16 sps:$4 sm:$0xff]  }
  0x9e   :  { %1840 = vmatprep.subr.bf16.mxu1 %v2821_v33  ;;  %v2903_v33 = vld [vmem:[#allocation2 + $0x6a8] ss:$16 sps:$4 sm:$0xff]  }
  0xa0   :  { %1800 = vmatpush1.bf16.msra.mxu0 %v2816_v34  ;;  %v2906_v34 = vld [vmem:[#allocation2 + $0x488] ss:$16 sps:$4 sm:$0xff]  }
  0xa1   :  { %1841 = vmatpush1.bf16.msra.mxu1 %v2819_v47  ;;  %1801 = vmatprep.subr.bf16.mxu0 %v2824_v51  ;;  %v2909_v47 = vld [vmem:[#allocation2 + $0x688] ss:$16 sps:$4 sm:$0xff]   ;;  %v2914_v51 = vld [vmem:[#allocation2 + $0x46c] ss:$16 sps:$4 sm:$0xff]  }
  0xa2   :  { %1842 = vmatprep.subr.bf16.mxu1 %v2827_v35  ;;  %v2917_v35 = vld [vmem:[#allocation2 + $0x66c] ss:$16 sps:$4 sm:$0xff]  }
  0xa4   :  { %1802 = vmatpush1.bf16.msra.mxu0 %v2822_v38  ;;  %v2920_v38 = vld [vmem:[#allocation2 + $0x44c] ss:$16 sps:$4 sm:$0xff]  }
  0xa5   :  { %1843 = vmatpush1.bf16.msra.mxu1 %v2825_v39  ;;  %1803 = vmatprep.subr.bf16.mxu0 %v2830_v40  ;;  %v2923_v39 = vld [vmem:[#allocation2 + $0x64c] ss:$16 sps:$4 sm:$0xff]   ;;  %v2918_v40 = vld [vmem:[#allocation2 + $0x448] ss:$16 sps:$4 sm:$0xff]  }
  0xa6   :  { %1844 = vmatprep.subr.bf16.mxu1 %v2833_v41  ;;  %v2921_v41 = vld [vmem:[#allocation2 + $0x648] ss:$16 sps:$4 sm:$0xff]  }
  0xa8   :  { %1804 = vmatpush1.bf16.msra.mxu0 %v2828_v42  ;;  %v2926_v42 = vld [vmem:[#allocation2 + $0x42c] ss:$16 sps:$4 sm:$0xff]  }
  0xa9   :  { %1845 = vmatpush1.bf16.msra.mxu1 %v2831_v43  ;;  %1805 = vmatprep.subr.bf16.mxu0 %v2836_v44  ;;  %v2929_v43 = vld [vmem:[#allocation2 + $0x62c] ss:$16 sps:$4 sm:$0xff]   ;;  %v2924_v44 = vld [vmem:[#allocation2 + $0x428] ss:$16 sps:$4 sm:$0xff]  }
  0xaa   :  { %1846 = vmatprep.subr.bf16.mxu1 %v2839_v45  ;;  %v2927_v45 = vld [vmem:[#allocation2 + $0x628] ss:$16 sps:$4 sm:$0xff]  }
  0xac   :  { %1806 = vmatpush1.bf16.msra.mxu0 %v2834_v46  ;;  %v2932_v46 = vld [vmem:[#allocation2 + $0x40c] ss:$16 sps:$4 sm:$0xff]  }
  0xad   :  { %1847 = vmatpush1.bf16.msra.mxu1 %v2837_v48  ;;  %1807 = vmatprep.subr.bf16.mxu0 %v2842_v49  ;;  %v2935_v48 = vld [vmem:[#allocation2 + $0x60c] ss:$16 sps:$4 sm:$0xff]   ;;  %v2930_v49 = vld [vmem:[#allocation2 + $0x408] ss:$16 sps:$4 sm:$0xff]  }
  0xae   :  { %1848 = vmatprep.subr.bf16.mxu1 %v2845_v50  ;;  %v2933_v50 = vld [vmem:[#allocation2 + $0x608] ss:$16 sps:$4 sm:$0xff]  }
  0xb0   :  { %1808 = vmatpush2.bf16.msra.mxu0 %v2840_v52  ;;  %v2938_v52 = vld [vmem:[#allocation2 + $0x5ec] ss:$16 sps:$4 sm:$0xff]  }
  0xb1   :  { %1849 = vmatpush2.bf16.msra.mxu1 %v2843_v53  ;;  %1809 = vmatprep.subr.bf16.mxu0 %v2848_v54  ;;  %v2941_v53 = vld [vmem:[#allocation2 + $0x7ec] ss:$16 sps:$4 sm:$0xff]   ;;  %v2936_v54 = vld [vmem:[#allocation2 + $0x5e8] ss:$16 sps:$4 sm:$0xff]  }
  0xb2   :  { %1850 = vmatprep.subr.bf16.mxu1 %v2851_v55  ;;  %v2939_v55 = vld [vmem:[#allocation2 + $0x7e8] ss:$16 sps:$4 sm:$0xff]  }
  0xb4   :  { %1810 = vmatpush2.bf16.msra.mxu0 %v2846_v56  ;;  %v2944_v56 = vld [vmem:[#allocation2 + $0x5cc] ss:$16 sps:$4 sm:$0xff]  }
  0xb5   :  { %1851 = vmatpush2.bf16.msra.mxu1 %v2849_v57  ;;  %1811 = vmatprep.subr.bf16.mxu0 %v2854_v58  ;;  %v2947_v57 = vld [vmem:[#allocation2 + $0x7cc] ss:$16 sps:$4 sm:$0xff]   ;;  %v2942_v58 = vld [vmem:[#allocation2 + $0x5c8] ss:$16 sps:$4 sm:$0xff]  }
  0xb6   :  { %1852 = vmatprep.subr.bf16.mxu1 %v2857_v59  ;;  %v2945_v59 = vld [vmem:[#allocation2 + $0x7c8] ss:$16 sps:$4 sm:$0xff]  }
  0xb8   :  { %1812 = vmatpush2.bf16.msra.mxu0 %v2852_v60  ;;  %v2950_v60 = vld [vmem:[#allocation2 + $0x5ac] ss:$16 sps:$4 sm:$0xff]  }
  0xb9   :  { %1853 = vmatpush2.bf16.msra.mxu1 %v2855_v61  ;;  %1813 = vmatprep.subr.bf16.mxu0 %v2860_v62  ;;  %v2953_v61 = vld [vmem:[#allocation2 + $0x7ac] ss:$16 sps:$4 sm:$0xff]   ;;  %v2948_v62 = vld [vmem:[#allocation2 + $0x5a8] ss:$16 sps:$4 sm:$0xff]  }
  0xba   :  { %1854 = vmatprep.subr.bf16.mxu1 %v2863_v63  ;;  %v2951_v63 = vld [vmem:[#allocation2 + $0x7a8] ss:$16 sps:$4 sm:$0xff]  }
  0xbc   :  { %1814 = vmatpush2.bf16.msra.mxu0 %v2858_v0  ;;  %v2956_v0 = vld [vmem:[#allocation2 + $0x58c] ss:$16 sps:$4 sm:$0xff]  }
  0xbd   :  { %1855 = vmatpush2.bf16.msra.mxu1 %v2861_v1  ;;  %1815 = vmatprep.subr.bf16.mxu0 %v2866_v2  ;;  %v2959_v1 = vld [vmem:[#allocation2 + $0x78c] ss:$16 sps:$4 sm:$0xff]   ;;  %v2954_v2 = vld [vmem:[#allocation2 + $0x588] ss:$16 sps:$4 sm:$0xff]  }
  0xbe   :  { %1856 = vmatprep.subr.bf16.mxu1 %v2869_v3  ;;  %v2957_v3 = vld [vmem:[#allocation2 + $0x788] ss:$16 sps:$4 sm:$0xff]  }
  0xc0   :  { %1816 = vmatpush2.bf16.msra.mxu0 %v2864_v4  ;;  %v2962_v4 = vld [vmem:[#allocation2 + $0x56c] ss:$16 sps:$4 sm:$0xff]  }
  0xc1   :  { %1857 = vmatpush2.bf16.msra.mxu1 %v2867_v5  ;;  %1817 = vmatprep.subr.bf16.mxu0 %v2872_v8  ;;  %v2965_v5 = vld [vmem:[#allocation2 + $0x76c] ss:$16 sps:$4 sm:$0xff]   ;;  %v2960_v8 = vld [vmem:[#allocation2 + $0x568] ss:$16 sps:$4 sm:$0xff]  }
  0xc2   :  { %1858 = vmatprep.subr.bf16.mxu1 %v2875_v9  ;;  %v2963_v9 = vld [vmem:[#allocation2 + $0x768] ss:$16 sps:$4 sm:$0xff]  }
  0xc4   :  { %1818 = vmatpush2.bf16.msra.mxu0 %v2870_v10  ;;  %v2968_v10 = vld [vmem:[#allocation2 + $0x54c] ss:$16 sps:$4 sm:$0xff]  }
  0xc5   :  { %1859 = vmatpush2.bf16.msra.mxu1 %v2873_v11  ;;  %1819 = vmatprep.subr.bf16.mxu0 %v2878_v12  ;;  %v2971_v11 = vld [vmem:[#allocation2 + $0x74c] ss:$16 sps:$4 sm:$0xff]   ;;  %v2966_v12 = vld [vmem:[#allocation2 + $0x548] ss:$16 sps:$4 sm:$0xff]  }
  0xc6   :  { %1860 = vmatprep.subr.bf16.mxu1 %v2881_v13  ;;  %v2969_v13 = vld [vmem:[#allocation2 + $0x748] ss:$16 sps:$4 sm:$0xff]  }
  0xc8   :  { %1820 = vmatpush2.bf16.msra.mxu0 %v2876_v14  ;;  %v2974_v14 = vld [vmem:[#allocation2 + $0x52c] ss:$16 sps:$4 sm:$0xff]  }
  0xc9   :  { %1861 = vmatpush2.bf16.msra.mxu1 %v2879_v15  ;;  %1821 = vmatprep.subr.bf16.mxu0 %v2884_v18  ;;  %v2977_v15 = vld [vmem:[#allocation2 + $0x72c] ss:$16 sps:$4 sm:$0xff]   ;;  %v2972_v18 = vld [vmem:[#allocation2 + $0x528] ss:$16 sps:$4 sm:$0xff]  }
  0xca   :  { %1862 = vmatprep.subr.bf16.mxu1 %v2887_v19  ;;  %v2975_v19 = vld [vmem:[#allocation2 + $0x728] ss:$16 sps:$4 sm:$0xff]  }
  0xcc   :  { %1822 = vmatpush2.bf16.msra.mxu0 %v2882_v20  ;;  %v2980_v20 = vld [vmem:[#allocation2 + $0x50c] ss:$16 sps:$4 sm:$0xff]  }
  0xcd   :  { %1863 = vmatpush2.bf16.msra.mxu1 %v2885_v21  ;;  %1873 = vmatprep.subr.bf16.mxu0 %v2890_v22  ;;  %v2983_v21 = vld [vmem:[#allocation2 + $0x70c] ss:$16 sps:$4 sm:$0xff]   ;;  %v2978_v22 = vld [vmem:[#allocation2 + $0x508] ss:$16 sps:$4 sm:$0xff]  }
  0xce   :  { %1914 = vmatprep.subr.bf16.mxu1 %v2893_v23  ;;  %v2981_v23 = vld [vmem:[#allocation2 + $0x708] ss:$16 sps:$4 sm:$0xff]  }
  0xcf   :  { %1824 = vmatmul.mubr.bf16.vlgmr.msra.gmra.mxu0 %v3093_v6  ;;  %v2908_v6 = vld [vmem:[#allocation2 + $0x48c] ss:$16 sps:$4 sm:$0xff]  }
  0xd0   :  { %1865 = vmatmul.mubr.bf16.vlgmr.msra.gmra.mxu1 %v3095_v7  ;;  %1874 = vmatpush1.bf16.msra.mxu0 %v2888_v24  ;;  %v2911_v7 = vld [vmem:[#allocation2 + $0x68c] ss:$16 sps:$4 sm:$0xff]  }
  0xd1   :  { %1915 = vmatpush1.bf16.msra.mxu1 %v2891_v25  ;;  %1875 = vmatprep.subr.bf16.mxu0 %v2896_v26  ;;  %v2008_v24 = vld [vmem:[%s3364_s3 + $0xf8] sm:$0xff]  ;;  %v2007_v26 = vld [vmem:[%s3364_s3 + $0xf0] sm:$0xff] }
  0xd2   :  { %1916 = vmatprep.subr.bf16.mxu1 %v2899_v27  ;;  %1905 = vmatprep.mubr.bf16.mxu0 %v3111_v36  ;;  %v2912_v36 = vld [vmem:[#allocation2 + $0x468] ss:$16 sps:$4 sm:$0xff]  }
  0xd3   :  { %1946 = vmatprep.mubr.bf16.mxu1 %v3115_v37  ;;  %v2915_v37 = vld [vmem:[#allocation2 + $0x668] ss:$16 sps:$4 sm:$0xff]  }
  0xd4   :  { %1876 = vmatpush1.bf16.msra.mxu0 %v2894_v28  ;;  %v1992_v25 = vld [vmem:[%s3364_s3 + $0x78] sm:$0xff] }
  0xd5   :  { %1917 = vmatpush1.bf16.msra.mxu1 %v2897_v29  ;;  %1877 = vmatprep.subr.bf16.mxu0 %v2902_v30  ;;  %v1991_v29 = vld [vmem:[%s3364_s3 + $0x70] sm:$0xff]  ;;  %v2006_v30 = vld [vmem:[%s3364_s3 + $0xe8] sm:$0xff] }
  0xd6   :  { %1918 = vmatprep.subr.bf16.mxu1 %v2905_v31 }
  0xd8   :  { %1878 = vmatpush1.bf16.msra.mxu0 %v2900_v32 }
  0xd9   :  { %1919 = vmatpush1.bf16.msra.mxu1 %v2903_v33  ;;  %1879 = vmatprep.subr.bf16.mxu0 %v2908_v6 }
  0xda   :  { %1920 = vmatprep.subr.bf16.mxu1 %v2911_v7  ;;  %v1989_v7 = vld [vmem:[%s3364_s3 + $0x60] sm:$0xff] }
  0xdc   :  { %1880 = vmatpush1.bf16.msra.mxu0 %v2906_v34  ;;  %v2004_v34 = vld [vmem:[%s3364_s3 + $0xd8] sm:$0xff] }
  0xdd   :  { %1921 = vmatpush1.bf16.msra.mxu1 %v2909_v47  ;;  %1881 = vmatprep.subr.bf16.mxu0 %v2914_v51  ;;  %v1988_v47 = vld [vmem:[%s3364_s3 + $0x58] sm:$0xff] }
  0xde   :  { %1922 = vmatprep.subr.bf16.mxu1 %v2917_v35 }
  0xe0   :  { %1882 = vmatpush1.bf16.msra.mxu0 %v2912_v36  ;;  %v2040_v36 = vld [vmem:[%s3364_s3 + $0x1f8] sm:$0xff] }
  0xe1   :  { %1923 = vmatpush1.bf16.msra.mxu1 %v2915_v37  ;;  %1883 = vmatprep.subr.bf16.mxu0 %v2920_v38  ;;  %v2024_v37 = vld [vmem:[%s3364_s3 + $0x178] sm:$0xff]  ;;  %v2039_v38 = vld [vmem:[%s3364_s3 + $0x1f0] sm:$0xff] }
  0xe2   :  { %1924 = vmatprep.subr.bf16.mxu1 %v2923_v39  ;;  %v2003_v39 = vld [vmem:[%s3364_s3 + $0xd0] sm:$0xff] }
  0xe4   :  { %1884 = vmatpush1.bf16.msra.mxu0 %v2918_v40  ;;  %v2023_v40 = vld [vmem:[%s3364_s3 + $0x170] sm:$0xff] }
  0xe5   :  { %1925 = vmatpush1.bf16.msra.mxu1 %v2921_v41  ;;  %1885 = vmatprep.subr.bf16.mxu0 %v2926_v42  ;;  %v1987_v41 = vld [vmem:[%s3364_s3 + $0x50] sm:$0xff]  ;;  %v2038_v42 = vld [vmem:[%s3364_s3 + $0x1e8] sm:$0xff] }
  0xe6   :  { %1926 = vmatprep.subr.bf16.mxu1 %v2929_v43  ;;  %v2002_v43 = vld [vmem:[%s3364_s3 + $0xc8] sm:$0xff] }
  0xe8   :  { %1886 = vmatpush1.bf16.msra.mxu0 %v2924_v44  ;;  %v2022_v44 = vld [vmem:[%s3364_s3 + $0x168] sm:$0xff] }
  0xe9   :  { %1927 = vmatpush1.bf16.msra.mxu1 %v2927_v45  ;;  %1887 = vmatprep.subr.bf16.mxu0 %v2932_v46  ;;  %v1986_v45 = vld [vmem:[%s3364_s3 + $0x48] sm:$0xff]  ;;  %v2037_v46 = vld [vmem:[%s3364_s3 + $0x1e0] sm:$0xff] }
  0xea   :  { %1928 = vmatprep.subr.bf16.mxu1 %v2935_v48  ;;  %v2001_v48 = vld [vmem:[%s3364_s3 + $0xc0] sm:$0xff] }
  0xec   :  { %1888 = vmatpush1.bf16.msra.mxu0 %v2930_v49  ;;  %v2021_v49 = vld [vmem:[%s3364_s3 + $0x160] sm:$0xff] }
  0xed   :  { %1929 = vmatpush1.bf16.msra.mxu1 %v2933_v50  ;;  %1889 = vmatprep.subr.bf16.mxu0 %v2938_v52  ;;  %v1985_v50 = vld [vmem:[%s3364_s3 + $0x40] sm:$0xff]  ;;  %v2036_v52 = vld [vmem:[%s3364_s3 + $0x1d8] sm:$0xff] }
  0xee   :  { %1930 = vmatprep.subr.bf16.mxu1 %v2941_v53  ;;  %v2000_v53 = vld [vmem:[%s3364_s3 + $0xb8] sm:$0xff] }
  0xf0   :  { %1890 = vmatpush2.bf16.msra.mxu0 %v2936_v54  ;;  %v2020_v54 = vld [vmem:[%s3364_s3 + $0x158] sm:$0xff] }
  0xf1   :  { %1931 = vmatpush2.bf16.msra.mxu1 %v2939_v55  ;;  %1891 = vmatprep.subr.bf16.mxu0 %v2944_v56  ;;  %v1984_v55 = vld [vmem:[%s3364_s3 + $0x38] sm:$0xff]  ;;  %v2035_v56 = vld [vmem:[%s3364_s3 + $0x1d0] sm:$0xff] }
  0xf2   :  { %1932 = vmatprep.subr.bf16.mxu1 %v2947_v57  ;;  %v1999_v57 = vld [vmem:[%s3364_s3 + $0xb0] sm:$0xff] }
  0xf4   :  { %1892 = vmatpush2.bf16.msra.mxu0 %v2942_v58  ;;  %v2019_v58 = vld [vmem:[%s3364_s3 + $0x150] sm:$0xff] }
  0xf5   :  { %1933 = vmatpush2.bf16.msra.mxu1 %v2945_v59  ;;  %1893 = vmatprep.subr.bf16.mxu0 %v2950_v60  ;;  %v1983_v59 = vld [vmem:[%s3364_s3 + $0x30] sm:$0xff]  ;;  %v2034_v60 = vld [vmem:[%s3364_s3 + $0x1c8] sm:$0xff] }
  0xf6   :  { %1934 = vmatprep.subr.bf16.mxu1 %v2953_v61  ;;  %v1998_v61 = vld [vmem:[%s3364_s3 + $0xa8] sm:$0xff] }
  0xf8   :  { %1894 = vmatpush2.bf16.msra.mxu0 %v2948_v62  ;;  %v2018_v62 = vld [vmem:[%s3364_s3 + $0x148] sm:$0xff] }
  0xf9   :  { %1935 = vmatpush2.bf16.msra.mxu1 %v2951_v63  ;;  %1895 = vmatprep.subr.bf16.mxu0 %v2956_v0  ;;  %v1982_v63 = vld [vmem:[%s3364_s3 + $0x28] sm:$0xff]  ;;  %v2033_v0 = vld [vmem:[%s3364_s3 + $0x1c0] sm:$0xff] }
  0xfa   :  { %1936 = vmatprep.subr.bf16.mxu1 %v2959_v1  ;;  %v1997_v1 = vld [vmem:[%s3364_s3 + $0xa0] sm:$0xff] }
  0xfc   :  { %1896 = vmatpush2.bf16.msra.mxu0 %v2954_v2  ;;  %v2017_v2 = vld [vmem:[%s3364_s3 + $0x140] sm:$0xff] }
  0xfd   :  { %1937 = vmatpush2.bf16.msra.mxu1 %v2957_v3  ;;  %1897 = vmatprep.subr.bf16.mxu0 %v2962_v4  ;;  %v1981_v3 = vld [vmem:[%s3364_s3 + $0x20] sm:$0xff]  ;;  %v2032_v4 = vld [vmem:[%s3364_s3 + $0x1b8] sm:$0xff] }
  0xfe   :  { %1938 = vmatprep.subr.bf16.mxu1 %v2965_v5  ;;  %v1996_v5 = vld [vmem:[%s3364_s3 + $0x98] sm:$0xff] }
 0x100   :  { %1898 = vmatpush2.bf16.msra.mxu0 %v2960_v8  ;;  %v2016_v8 = vld [vmem:[%s3364_s3 + $0x138] sm:$0xff] }
 0x101   :  { %1939 = vmatpush2.bf16.msra.mxu1 %v2963_v9  ;;  %1899 = vmatprep.subr.bf16.mxu0 %v2968_v10  ;;  %v1980_v9 = vld [vmem:[%s3364_s3 + $0x18] sm:$0xff]  ;;  %v2031_v10 = vld [vmem:[%s3364_s3 + $0x1b0] sm:$0xff] }
 0x102   :  { %1940 = vmatprep.subr.bf16.mxu1 %v2971_v11  ;;  %v1995_v11 = vld [vmem:[%s3364_s3 + $0x90] sm:$0xff] }
 0x104   :  { %1900 = vmatpush2.bf16.msra.mxu0 %v2966_v12  ;;  %v2015_v12 = vld [vmem:[%s3364_s3 + $0x130] sm:$0xff] }
 0x105   :  { %1941 = vmatpush2.bf16.msra.mxu1 %v2969_v13  ;;  %1901 = vmatprep.subr.bf16.mxu0 %v2974_v14  ;;  %v1979_v13 = vld [vmem:[%s3364_s3 + $0x10] sm:$0xff]  ;;  %v2030_v14 = vld [vmem:[%s3364_s3 + $0x1a8] sm:$0xff] }
 0x106   :  { %1942 = vmatprep.subr.bf16.mxu1 %v2977_v15  ;;  %v1994_v15 = vld [vmem:[%s3364_s3 + $0x88] sm:$0xff] }
 0x108   :  { %1902 = vmatpush2.bf16.msra.mxu0 %v2972_v18  ;;  %v2014_v18 = vld [vmem:[%s3364_s3 + $0x128] sm:$0xff] }
 0x109   :  { %1943 = vmatpush2.bf16.msra.mxu1 %v2975_v19  ;;  %1903 = vmatprep.subr.bf16.mxu0 %v2980_v20  ;;  %v1978_v19 = vld [vmem:[%s3364_s3 + $0x8] sm:$0xff]  ;;  %v1993_v20 = vld [vmem:[%s3364_s3 + $0x80] sm:$0xff] }
 0x10a   :  { %1944 = vmatprep.subr.bf16.mxu1 %v2983_v21  ;;  %v1977_v21 = vld [vmem:[%s3364_s3] sm:$0xff] }
 0x10c   :  { %1904 = vmatpush2.bf16.msra.mxu0 %v2978_v22  ;;  %v299_v22 = vlaneseq }
 0x10d   :  { %1945 = vmatpush2.bf16.msra.mxu1 %v2981_v23  ;;  %2514 = vmatprep.subr.mxu0 %v2008_v24 }
 0x10e   :  { %2549 = vmatprep.subr.mxu1 %v2040_v36  ;;  %v3308_v23 = vshrl.u32 %v299_v22, 7  ;;  %v2012_v36 = vld [vmem:[%s3364_s3 + $0x118] sm:$0xff] }
 0x10f   :  { %v3144_v27 = vpop.f32.mrf.mxu0  ;;  %1906 = vmatmul.mubr.bf16.vlgmr.msra.gmra.mxu0 %v3121_v16  ;;  %v1990_v16 = vld [vmem:[%s3364_s3 + $0x68] sm:$0xff] }
 0x110   :  { %v3146_v28 = vpop.f32.mrf.mxu1  ;;  %1947 = vmatmul.mubr.bf16.vlgmr.msra.gmra.mxu1 %v3125_v17  ;;  %2515 = vmatpush3.msra.mxu0 %v1992_v25  ;;  %v2005_v17 = vld [vmem:[%s3364_s3 + $0xe0] sm:$0xff]  ;;  %v301_v24 = vsub.s32 0, %v3308_v23 }
 0x111   :  { %v3156_v31 = vpop.f32.mrf.mxu0  ;;  %2516 = vmatprep.subr.mxu0 %v2007_v26  ;;  %2550 = vmatpush3.msra.mxu1 %v2024_v37  ;;  %v297_v25 = vld [vmem:[%s3363_s2] sm:$0xf]  ;;  %v305_v26 = vsub.s32 1, %v3308_v23 }
 0x112   :  { %v3158_v32 = vpop.f32.mrf.mxu1  ;;  %2517 = vmatpush3.msra.mxu0 %v1991_v29  ;;  %2551 = vmatprep.subr.mxu1 %v2039_v38  ;;  %v302_v29 = vrot.slane %v297_v25, %v301_v24 }
 0x113   :  { %v1665_v33 = vpop.f32.mrf.mxu0  ;;  %2518 = vmatprep.subr.mxu0 %v2006_v30  ;;  %2552 = vmatpush3.msra.mxu1 %v2023_v40  ;;  %v306_v30 = vrot.slane %v297_v25, %v305_v26 }
 0x114   :  { %v1706_v6 = vpop.f32.mrf.mxu1  ;;  %2519 = vmatpush3.msra.mxu0 %v1990_v16  ;;  %2553 = vmatprep.subr.mxu1 %v2038_v42  ;;  %v1662_v16 = vadd.f32 %v3144_v27, %v302_v29  ;;  %v2028_v27 = vld [vmem:[%s3364_s3 + $0x198] sm:$0xff] }
 0x115   :  { %v1666_v51 = vpop.f32.mrf.mxu0  ;;  %2520 = vmatprep.subr.mxu0 %v2005_v17  ;;  %2554 = vmatpush3.msra.mxu1 %v2022_v44  ;;  %v1664_v17 = vadd.f32 %v3156_v31, %v306_v30  ;;  %v2029_v6 = vld [vmem:[%s3364_s3 + $0x1a0] sm:$0xff]  ;;  %v2026_v44 = vld [vmem:[%s3364_s3 + $0x188] sm:$0xff] }
 0x116   :  { %v1707_v35 = vpop.f32.mrf.mxu1  ;;  %2521 = vmatpush3.msra.mxu0 %v1989_v7  ;;  %2555 = vmatprep.subr.mxu1 %v2037_v46  ;;  %v1703_v33 = vadd.f32 %v3146_v28, %v1662_v16 }
 0x117   :  { %2522 = vmatprep.subr.mxu0 %v2004_v34  ;;  %2556 = vmatpush3.msra.mxu1 %v2021_v49  ;;  %v1705_v51 = vadd.f32 %v3158_v32, %v1664_v17  ;;  %v2027_v32 = vld [vmem:[%s3364_s3 + $0x190] sm:$0xff] }
 0x118   :  { %2523 = vmatpush3.msra.mxu0 %v1988_v47  ;;  %2557 = vmatprep.subr.mxu1 %v2036_v52  ;;  %v2013_v47 = vld [vmem:[%s3364_s3 + $0x120] sm:$0xff] }
 0x119   :  { %2524 = vmatprep.subr.mxu0 %v2003_v39  ;;  %2558 = vmatpush3.msra.mxu1 %v2020_v54  ;;  %v2009_v52 = vld [vmem:[%s3364_s3 + $0x100] sm:$0xff] }
 0x11a   :  { %2525 = vmatpush3.msra.mxu0 %v1987_v41  ;;  %2559 = vmatprep.subr.mxu1 %v2035_v56  ;;  %v2011_v41 = vld [vmem:[%s3364_s3 + $0x110] sm:$0xff] }
 0x11b   :  { %2526 = vmatprep.subr.mxu0 %v2002_v43  ;;  %2560 = vmatpush3.msra.mxu1 %v2019_v58 }
 0x11c   :  { %2527 = vmatpush3.msra.mxu0 %v1986_v45  ;;  %2561 = vmatprep.subr.mxu1 %v2034_v60 }
 0x11d   :  { %2528 = vmatprep.subr.mxu0 %v2001_v48  ;;  %2562 = vmatpush3.msra.mxu1 %v2018_v62  ;;  %v2010_v48 = vld [vmem:[%s3364_s3 + $0x108] sm:$0xff] }
 0x11e   :  { %2529 = vmatpush3.msra.mxu0 %v1985_v50  ;;  %2563 = vmatprep.subr.mxu1 %v2033_v0  ;;  %v2025_v50 = vld [vmem:[%s3364_s3 + $0x180] sm:$0xff]  ;;  %v3041_v0 = vmov 0  }
 0x11f   :  { %2530 = vmatprep.subr.mxu0 %v2000_v53  ;;  %2564 = vmatpush3.msra.mxu1 %v2017_v2  ;;  %v313_v2 = vsub.s32 3, %v3308_v23 }
 0x120   :  { %2531 = vmatpush3.msra.mxu0 %v1984_v55  ;;  %2565 = vmatprep.subr.mxu1 %v2032_v4 }
 0x121   :  { %2532 = vmatprep.subr.mxu0 %v1999_v57  ;;  %2566 = vmatpush3.msra.mxu1 %v2016_v8  ;;  %v314_v4 = vrot.slane %v297_v25, %v313_v2 }
 0x122   :  { %2533 = vmatpush3.msra.mxu0 %v1983_v59  ;;  %2567 = vmatprep.subr.mxu1 %v2031_v10 }
 0x123   :  { %2534 = vmatprep.subr.mxu0 %v1998_v61  ;;  %2568 = vmatpush3.msra.mxu1 %v2015_v12 }
 0x124   :  { %2535 = vmatpush3.msra.mxu0 %v1982_v63  ;;  %2569 = vmatprep.subr.mxu1 %v2030_v14 }
 0x125   :  { %2536 = vmatprep.subr.mxu0 %v1997_v1  ;;  %2570 = vmatpush3.msra.mxu1 %v2014_v18  ;;  %v309_v1 = vsub.s32 2, %v3308_v23 }
 0x126   :  { %2537 = vmatpush3.msra.mxu0 %v1981_v3  ;;  %2571 = vmatprep.subr.mxu1 %v2029_v6  ;;  %v2184_v6 = vld [vmem:[%s3365_s4] sm:$0xff] }
 0x127   :  { %2538 = vmatprep.subr.mxu0 %v1996_v5  ;;  %2572 = vmatpush3.msra.mxu1 %v2013_v47  ;;  %v310_v3 = vrot.slane %v297_v25, %v309_v1 }
 0x128   :  { %2539 = vmatpush3.msra.mxu0 %v1980_v9  ;;  %2573 = vmatprep.subr.mxu1 %v2028_v27 }
 0x129   :  { %2540 = vmatprep.subr.mxu0 %v1995_v11  ;;  %2574 = vmatpush3.msra.mxu1 %v2012_v36 }
 0x12a   :  { %2541 = vmatpush3.msra.mxu0 %v1979_v13  ;;  %2575 = vmatprep.subr.mxu1 %v2027_v32  ;;  %v2186_v32 = vand.u32 127, %v299_v22 }
 0x12b   :  { %2542 = vmatprep.subr.mxu0 %v1994_v15  ;;  %2576 = vmatpush3.msra.mxu1 %v2011_v41 }
 0x12c   :  { %2543 = vmatpush3.msra.mxu0 %v1978_v19  ;;  %2577 = vmatprep.subr.mxu1 %v2026_v44 }
 0x12d   :  { %2544 = vmatprep.subr.mxu0 %v1993_v20  ;;  %2578 = vmatpush3.msra.mxu1 %v2010_v48 }
 0x12e   :  { %2545 = vmatpush3.msra.mxu0 %v1977_v21  ;;  %2579 = vmatprep.subr.mxu1 %v2025_v50 }
 0x12f   :  { %2580 = vmatpush3.msra.mxu1 %v2009_v52  ;;  %2591 = vset.pattern.permute.xlu0 %v3041_v0 }
 0x14f   :  { %v1743_v7 = vpop.f32.mrf.mxu0 }
 0x150   :  { %v1784_v34 = vpop.f32.mrf.mxu1  ;;  %v1744_v35 = vadd.f32 %v1743_v7, %v1703_v33 }
 0x151   :  { %v1745_v28 = vpop.f32.mrf.mxu0 }
 0x152   :  { %v1786_v31 = vpop.f32.mrf.mxu1  ;;  %v1785_v37 = vadd.f32 %v1784_v34, %v1744_v35  ;;  %v1746_v38 = vadd.f32 %v1745_v28, %v1705_v51 }
 0x153   :  { %v1747_v39 = vpop.f32.mrf.mxu0 }
 0x154   :  { %v1788_v40 = vpop.f32.mrf.mxu1  ;;  %v1955_v42 = vmax.f32 %v1785_v37, 0.0  ;;  %v1787_v43 = vadd.f32 %v1786_v31, %v1746_v38 }
 0x155   :  { %v1748_v45 = vpop.f32.mrf.mxu0 }
 0x156   :  { %v1789_v46 = vpop.f32.mrf.mxu1  ;;  %v1956_v49 = vmax.f32 %v1787_v43, 0.0  ;;  %v1959_v53 = vmul.f32 %v1955_v42, %v1955_v42 }
 0x158   :  { %v1960_v54 = vmul.f32 %v1956_v49, %v1956_v49  ;;  %2105 = vmatprep.mubr.f32.mxu0 %v1956_v49 }
 0x159   :  { %2106 = vmatmul.mubr.f32.vlgmr.msra.gmra.mxu0 %v1955_v42 }
 0x15a   :  { %v1963_v55 = vadd.f32 %v1960_v54, %v1959_v53 }
 0x18f   :  { %v1825_v56 = vpop.f32.mrf.mxu0 }
 0x190   :  { %v1866_v57 = vpop.f32.mrf.mxu1  ;;  %v1826_v5 = vadd.f32 %v1825_v56, %v310_v3 }
 0x191   :  { %v1827_v58 = vpop.f32.mrf.mxu0 }
 0x192   :  { %v1868_v59 = vpop.f32.mrf.mxu1  ;;  %v1828_v8 = vadd.f32 %v1827_v58, %v314_v4  ;;  %v1867_v9 = vadd.f32 %v1866_v57, %v1826_v5 }
 0x193   :  { %v1829_v60 = vpop.f32.mrf.mxu0 }
 0x194   :  { %v1870_v61 = vpop.f32.mrf.mxu1  ;;  %v1869_v12 = vadd.f32 %v1868_v59, %v1828_v8 }
 0x195   :  { %v1830_v62 = vpop.f32.mrf.mxu0 }
 0x196   :  { %v1871_v63 = vpop.f32.mrf.mxu1 }
 0x1cf   :  { %v1907_v10 = vpop.f32.mrf.mxu0 }
 0x1d0   :  { %v1948_v11 = vpop.f32.mrf.mxu1  ;;  %v1908_v13 = vadd.f32 %v1907_v10, %v1867_v9 }
 0x1d1   :  { %v1909_v14 = vpop.f32.mrf.mxu0 }
 0x1d2   :  { %v1950_v15 = vpop.f32.mrf.mxu1  ;;  %v1949_v18 = vadd.f32 %v1948_v11, %v1908_v13  ;;  %v1910_v19 = vadd.f32 %v1909_v14, %v1869_v12 }
 0x1d3   :  { %v1911_v20 = vpop.f32.mrf.mxu0 }
 0x1d4   :  { %v1952_v21 = vpop.f32.mrf.mxu1  ;;  %v1957_v24 = vmax.f32 %v1949_v18, 0.0  ;;  %v1951_v26 = vadd.f32 %v1950_v15, %v1910_v19 }
 0x1d5   :  { %v1912_v29 = vpop.f32.mrf.mxu0 }
 0x1d6   :  { %v1953_v30 = vpop.f32.mrf.mxu1  ;;  %v1961_v23 = vmul.f32 %v1957_v24, %v1957_v24  ;;  %v1958_v16 = vmax.f32 %v1951_v26, 0.0 }
 0x1d8   :  { %2175 = vmatprep.mubr.f32.mxu1 %v1958_v16  ;;  %v1962_v25 = vmul.f32 %v1958_v16, %v1958_v16  ;;  %v1964_v17 = vadd.f32 %v1963_v55, %v1961_v23 }
 0x1d9   :  { %2176 = vmatmul.mubr.f32.vlgmr.msra.gmra.mxu1 %v1957_v24 }
 0x1da   :  { %v1965_v33 = vadd.f32 %v1964_v17, %v1962_v25 }
 0x1dc   :  { %1966 = vadd.xlane.f32.xlu0 %v1965_v33 }
 0x1f2   :  { %2188 = vperm.xlu0 %2591, %v2184_v6  }
 0x219   :  { %v2546_v31 = vpop.f32.mrf.mxu0 }
 0x21b   :  { %v2547_v36 = vpop.f32.mrf.mxu0 }
 0x21c   :  { %v2548_v39 = vadd.f32 %v2547_v36, %v2546_v31 }
 0x265   :  { %v1967_v7 = vpop.xlane.xlu0 %1966 }
 0x266   :  { %2984 = vrsqrt.f32 %v1967_v7  ;;  %vm1970_vm0 = vcmp.eq.f32.partialorder %v1967_v7, inf  ;;  %v1973_v35 = vand.u32 2147483648, %v1967_v7  ;;  %vm1972_vm1 = vcmp.eq.f32.partialorder %v1967_v7, 0.0 }
 0x26d   :  { %v2189_v41 = vpop.permute.xlu0 %2188 }
 0x26e   :  { %vm2190_vm2 = vcmp.eq.s32.totalorder %v2186_v32, %v2189_v41 }
 0x273   :  { %v2985_v34 = vpop.eup %2984 }
 0x274   :  { %v1969_v47 = vmul.f32 %v2985_v34, %v1967_v7 }
 0x276   :  { %v1971_v51 = vsel %vm1970_vm0, %v1967_v7, %v1969_v47 }
 0x277   :  { %v1974_v27 = vsel %vm1972_vm1, %v1973_v35, %v1971_v51 }
 0x278   :  { %v1975_v28 = vmax.f32 %v1974_v27, 1e-12 }
 0x27a   :  { %2986 = vrcp.f32 %v1975_v28 }
 0x287   :  { %v2987_v43 = vpop.eup %2986 }
 0x299   :  { %v2581_v37 = vpop.f32.mrf.mxu1 }
 0x29b   :  { %v2582_v38 = vpop.f32.mrf.mxu1 }
 0x29c   :  { %v2583_v40 = vadd.f32 %v2582_v38, %v2581_v37 }
 0x29e   :  { %v2178_v42 = vadd.f32 %v2583_v40, %v2548_v39 }
 0x2a0   :  { %v2181_v44 = vmul.f32 %v2987_v43, %v2178_v42 }
 0x2a2   :  { %v2197_v45 = vmul.f32 30.0, %v2181_v44  ;;  %2183 = vst.msk [vmem:[%s3366_s5] sm:$0xff] %vm2182_vm3, %v2181_v44  ;;  %v2191_v46 = vsel %vm2190_vm2, %v2181_v44, 0.0  ;;  %s3042_s5 = smov [#allocation5]  }
 0x2a3   :  { %v2192_v48 = vsel %vm2182_vm3, %v2191_v46, 0.0  ;;  %s2238_s11 = sshll.u32 %s3042_s5, 4  ;;  %s2239_s11 = int_to_ptr.vmem [resolvable:$true] %s2238_s11 }
 0x2a4   :  { %v2198_v49 = vmul.f32 1.442695, %v2197_v45  ;;  %2193 = vadd.xlane.f32.xlu1 %v2192_v48  ;;  %s3014_s13 = scalar_lea.vmem %s2239_s11, 128  ;;  %p3019_p6 = scmp.lt.s32.totalorder %s2239_s11, %s2239_s11 }
 0x2a5   :  { %p3015_p5 = scmp.ne.s32.totalorder %s2239_s11, %s3014_s13  ;;  %p3020_p7 = scmp.lt.s32.totalorder %s3014_s13, %s3014_s13 }
 0x2a6   :  { %2988 = vpow2.f32 %v2198_v49 }
 0x2a7   :  { %p3021_p8 = por %p3020_p7, %p3019_p6 }
 0x2a9   :  { %p3022_p9 = pnand %p3021_p8, %p3015_p5 }
 0x2b3   :  { %v2989_v50 = vpop.eup %2988 }
 0x2b4   :  { %v2200_v22 = vsel %vm2190_vm2, 0.0, %v2989_v50 }
 0x2b5   :  { %v2201_v52 = vsel %vm2182_vm3, %v2200_v22, 0.0 }
 0x2b6   :  { %2202 = vadd.xlane.f32.xlu1 %v2201_v52 }
 0x32d   :  { %v2194_v53 = vpop.xlane.xlu1 %2193 }
 0x32e   :  { %v2513_v54 = vadd.f32 -0.4, %v2194_v53 }
 0x330   :  { %v2196_v55 = vmul.f32 30.0, %v2513_v54 }
 0x332   :  { %v2204_v56 = vmul.f32 1.442695, %v2196_v55 }
 0x334   :  { %2990 = vpow2.f32 %v2204_v56 }
 0x33f   :  { %v2203_v58 = vpop.xlane.xlu1 %2202 }
 0x341   :  { %v2991_v57 = vpop.eup %2990 }
 0x342   :  { %v2206_v59 = vadd.f32 %v2991_v57, %v2203_v58 }
 0x344   :  { %2992 = vlog2.f32 %v2206_v59 }
 0x351   :  { %v2993_v60 = vpop.eup %2992 }
 0x352   :  { %v2208_v61 = vmul.f32 0.6931472, %v2993_v60 }
 0x354   :  { %v2209_v62 = vsub.f32 %v2196_v55, %v2208_v61 }
 0x356   :  { %v2218_v63 = vsel %vm2217_vm4, %v2209_v62, 0.0 }
 0x357   :  { %2219 = vadd.xlane.f32.xlu1 %v2218_v63 }
 0x3e0   :  { %v2220_v0 = vpop.xlane.xlu1 %2219 }
 0x3e1   :  { %v2221_v1 = vrot.slane %v2220_v0, 4 }
 0x3e3   :  { %v2222_v2 = vadd.f32 %v2221_v1, %v2220_v0 }
 0x3e5   :  { %v2223_v3 = vrot.slane %v2222_v2, 2 }
 0x3e7   :  { %v2224_v4 = vadd.f32 %v2223_v3, %v2222_v2 }
 0x3e9   :  { %v2225_v5 = vrot.slane %v2224_v4, 1 }
 0x3eb   :  { %v2226_v8 = vadd.f32 %v2225_v5, %v2224_v4 }
 0x3ed   :  { %2584 = vpush %v2226_v8 }
 0x41e   :  { %s2585_s12 = spop %2584 }
 0x41f   :  { %v2228_v9 = vstv %s2585_s12 }
 0x420   :  { %2229 = vst [vmem:[#allocation5] sm:$0xff] %v2228_v9 }
 0x421   :  { %3025 = shalt.err (!%p3022_p9)
}
 0x422   :  { %2241 = dma.vmem_to_hbm [thread:$0]  %s2239_s11, 128, %s3367_s6, [#allocation4]  }
 0x423   :  { %3036 = dma.done.wait [#allocation4], 128  }
 0x424   :  { %3037 = vsyncadd [#allocation4], 4294967168 }
 0x425   :  { %2247 = vsyncpa [#allocation3], 1 }
 0x426   :  { %2248 = vsyncpa [#allocation4], 1 }

</bundles_post_ra>
